<compile_context>
chip_gen: v7x
topology: tpu7x:2x2x1
jax: 0.10.0
libtpu: 0.0.40
codegen_flags: <defaults>
</compile_context>

<pallas_src>
import functools

import jax
import jax.numpy as jnp
from jax.experimental import pallas as pl
from jax.experimental.pallas import tpu as pltpu

LANE = 128


def _round_up(v, m):
    return (v + m - 1) // m * m


def _vmem_limit_bytes():
    cap = 64 * 1024 * 1024
    try:
        cap = int(getattr(pltpu.get_tpu_info(), "vmem_capacity_bytes", cap))
    except Exception:
        pass
    # ~48 MiB on v7x (64 MiB physical), up to 96 MiB on v5e/v6e (128 MiB).
    return min(96 * 1024 * 1024, (cap * 3) // 4)


# --------------- kernel 1: GCNConv + LeakyReLU + per-tile max pool ----------
def gcn_conv_pool_kernel(kblk_ref, nnz_ref, a_ref, feat_ref, w1_ref, b1_ref,
                         batch_ref, pool_ref, acc_ref, *, tk, num_graphs_pad,
                         negative_slope, apply_w1, feat_resident):
    i = pl.program_id(0)
    k = pl.program_id(1)
    num_k = pl.num_programs(1)

    @pl.when(k == 0)
    def _():
        acc_ref[...] = jnp.zeros_like(acc_ref)

    # Skip zero blocks of A_hat: beyond nnz[i] the kblk entries repeat the last
    # valid block index (so no extra DMA) and the MXU work is gated off.
    @pl.when(k < nnz_ref[i])
    def _():
        if feat_resident:
            kb = kblk_ref[i * num_k + k]
            start = pl.multiple_of(kb * tk, LANE)
            feat = feat_ref[pl.ds(start, tk), :]
        else:
            feat = feat_ref[...]
        acc_ref[...] += jnp.dot(a_ref[...], feat,
                                preferred_element_type=jnp.float32)

    @pl.when(k == num_k - 1)
    def _():
        acc = acc_ref[...]                                   # (tm, fd) f32
        if apply_w1:
            # (A_hat @ X) @ W1 + b1, bf16 MXU operands, f32 accumulation.
            h = jnp.dot(acc.astype(jnp.bfloat16), w1_ref[...],
                        preferred_element_type=jnp.float32) + b1_ref[...]
        else:
            # X @ W1 was pre-folded into `feat`; only the bias remains.
            h = acc + b1_ref[...]

        # TODO(synk): dropout is eval-mode identity (no RNG mask); BatchNorm is
        # defined in the module but never used in forward(), so it is omitted.
        h = jnp.where(h > 0, h, negative_slope * h)          # LeakyReLU, f32

        # Per-graph masked max: live data stays (tm, h_pad); one lane-dense
        # (b_pad, h_pad) store per row tile.  Padded node rows have batch=-1.
        bids = batch_ref[...]                                # (tm, 1) int32
        neg_inf = jnp.float32(-jnp.inf)
        rows = []
        for g in range(num_graphs_pad):                      # small, unrolled
            rows.append(jnp.max(jnp.where(bids == g, h, neg_inf),
                                axis=0, keepdims=True))      # (1, h_pad)
        pool_ref[...] = jnp.concatenate(rows, axis=0)[None]  # (1, B_pad, H_pad)


# --------------- kernel 2: chunked cross-tile max reduce + Linear head ------
def gcn_head_kernel(pool_parts_ref, w2_ref, b2_ref, out_ref, pool_ref, acc_ref):
    t = pl.program_id(0)

    @pl.when(t == 0)
    def _():
        acc_ref[...] = jnp.full(acc_ref.shape, -jnp.inf, acc_ref.dtype)

    acc_ref[...] = jnp.maximum(acc_ref[...],
                               jnp.max(pool_parts_ref[...], axis=0))

    @pl.when(t == pl.num_programs(0) - 1)
    def _():
        pooled = acc_ref[...]
        pool_ref[...] = pooled
        # Graphs/columns that never saw a node stay -inf: zero them so the W2
        # matmul cannot produce NaN (those rows are sliced off in the wrapper).
        safe = jnp.where(pooled > -jnp.inf, pooled, 0.0)
        out_ref[...] = jnp.dot(safe, w2_ref[...],
                               preferred_element_type=jnp.float32) + b2_ref[...]


# ------------------------------ JAX wrapper ----------------------------------
@functools.partial(jax.jit, static_argnums=(4,))
def gcn_forward(x, edge_index, batch, params, num_graphs, edge_weights=None):
    w1, b1, w2, b2 = params
    n, f = x.shape
    hidden = w1.shape[1]
    classes = w2.shape[1]

    # ---- tile / padding selection (shape-static) ----
    if n <= 512:
        tm = tk = _round_up(n, LANE)
    else:
        tm, tk = 512, 1024
    n_pad = _round_up(n, max(tm, tk))
    num_i = n_pad // tm
    num_k = n_pad // tk

    h_pad = _round_up(hidden, LANE)
    c_pad = _round_up(classes, LANE)
    f_pad = _round_up(f, LANE)
    b_pad = _round_up(num_graphs, 8)

    # ---- D^-1/2 (A + I) D^-1/2 (PyG gcn_norm, add_remaining_self_loops),
    #      built directly into the padded buffer and cast to bf16 once. ----
    src = edge_index[0]
    dst = edge_index[1]
    if edge_weights is None:
        ew = jnp.ones(src.shape[0], jnp.float32)
    else:
        ew = edge_weights.astype(jnp.float32)
    a = jnp.zeros((n_pad, n_pad), jnp.float32).at[dst, src].add(ew)
    ridx = jnp.arange(n_pad)
    diag = jnp.diagonal(a)
    self_loop = jnp.where((diag == 0.0) & (ridx < n), 1.0, 0.0)
    a = a.at[ridx, ridx].add(self_loop)
    deg = a.sum(axis=1)
    dinv = jnp.where(deg > 0, jax.lax.rsqrt(deg), 0.0)
    a_p = (dinv[:, None] * a * dinv[None, :]).astype(jnp.bfloat16)

    # ---- block-sparsity metadata (scalar-prefetched into SMEM) ----
    blocks = a_p.reshape(num_i, tm, num_k, tk)
    nz = jnp.any(blocks != 0, axis=(1, 3))                  # (num_i, num_k)
    nnz = nz.sum(axis=1).astype(jnp.int32)                  # (num_i,)
    karange = jnp.arange(num_k, dtype=jnp.int32)
    keys = jnp.where(nz, jnp.int32(0), jnp.int32(num_k)) + karange[None, :]
    order = jnp.argsort(keys, axis=1).astype(jnp.int32)     # nonzero blocks first
    last_valid = jnp.take_along_axis(order, jnp.maximum(nnz - 1, 0)[:, None],
                                     axis=1)
    kblk = jnp.where(karange[None, :] < nnz[:, None], order, last_valid)
    kblk = kblk.reshape(-1).astype(jnp.int32)               # (num_i * num_k,)

    # ---- features / weights ----
    # Pre-fold X @ W1 whenever the hidden width fits in one lane tile (or is
    # no wider than F); otherwise stream X and apply W1 in the epilogue.
    pre_fold = (h_pad <= LANE) or (hidden <= f)
    if pre_fold:
        fd = h_pad
        xw = jnp.dot(x.astype(jnp.float32), w1.astype(jnp.float32))
        feat_p = jnp.zeros((n_pad, fd), jnp.bfloat16).at[:n, :hidden].set(
            xw.astype(jnp.bfloat16))
        w1_p = jnp.zeros((8, LANE), jnp.bfloat16)            # unused dummy
    else:
        fd = f_pad
        feat_p = jnp.zeros((n_pad, fd), jnp.bfloat16).at[:n, :f].set(
            x.astype(jnp.bfloat16))
        w1_p = jnp.zeros((fd, h_pad), jnp.bfloat16).at[:f, :hidden].set(
            w1.astype(jnp.bfloat16))
    b1_p = jnp.zeros((1, h_pad), jnp.float32).at[0, :hidden].set(b1)
    batch_p = jnp.full((n_pad, 1), -1, jnp.int32).at[:n, 0].set(
        batch.astype(jnp.int32))

    # Keep the feature operand VMEM-resident when it (double-buffered) fits.
    feat_resident = (n_pad * fd * 2) <= (12 * 1024 * 1024)

    kernel1 = functools.partial(
        gcn_conv_pool_kernel, tk=tk, num_graphs_pad=b_pad,
        negative_slope=0.01, apply_w1=not pre_fold, feat_resident=feat_resident)

    a_spec = pl.BlockSpec((tm, tk),
                          lambda i, k, kblk, nnz: (i, kblk[i * num_k + k]))
    if feat_resident:
        feat_spec = pl.BlockSpec((n_pad, fd), lambda i, k, kblk, nnz: (0, 0))
    else:
        feat_spec = pl.BlockSpec(
            (tk, fd), lambda i, k, kblk, nnz: (kblk[i * num_k + k], 0))

    flops = 2 * n_pad * n_pad * fd + (0 if pre_fold else 2 * n_pad * f_pad * h_pad)
    bytes_accessed = (n_pad * n_pad * 2 + n_pad * fd * 2
                      + num_i * b_pad * h_pad * 4)

    pool_parts = pl.pallas_call(
        kernel1,
        out_shape=jax.ShapeDtypeStruct((num_i, b_pad, h_pad), jnp.float32),
        grid_spec=pltpu.PrefetchScalarGridSpec(
            num_scalar_prefetch=2,
            grid=(num_i, num_k),
            in_specs=[
                a_spec,                                               # A_hat tile
                feat_spec,                                            # features
                pl.BlockSpec(w1_p.shape, lambda i, k, kblk, nnz: (0, 0)),
                pl.BlockSpec((1, h_pad), lambda i, k, kblk, nnz: (0, 0)),
                pl.BlockSpec((tm, 1), lambda i, k, kblk, nnz: (i, 0)),  # batch ids
            ],
            out_specs=pl.BlockSpec((1, b_pad, h_pad),
                                   lambda i, k, kblk, nnz: (i, 0, 0)),
            scratch_shapes=[pltpu.VMEM((tm, fd), jnp.float32)],
        ),
        compiler_params=pltpu.CompilerParams(
            dimension_semantics=("parallel", "arbitrary"),
            vmem_limit_bytes=_vmem_limit_bytes(),
        ),
        cost_estimate=pl.CostEstimate(
            flops=flops, transcendentals=0, bytes_accessed=bytes_accessed),
    )(kblk, nnz, a_p, feat_p, w1_p, b1_p, batch_p)

    # ---- head: chunked cross-tile max + pooled @ W2 + b2 ----
    w2_p = jnp.zeros((h_pad, c_pad), jnp.float32).at[:hidden, :classes].set(w2)
    b2_p = jnp.zeros((1, c_pad), jnp.float32).at[0, :classes].set(b2)

    # Chunk pool_parts along the tile axis so it never has to be VMEM-resident
    # as one slab (matters on v7x when num_i is large); ti divides num_i.
    ti_cap = max(1, (8 * 1024 * 1024) // (b_pad * h_pad * 4))
    ti = 1
    for d in range(1, num_i + 1):
        if num_i % d == 0 and d <= ti_cap:
            ti = d

    logits_p, pooled_p = pl.pallas_call(
        gcn_head_kernel,
        out_shape=(jax.ShapeDtypeStruct((b_pad, c_pad), jnp.float32),
                   jax.ShapeDtypeStruct((b_pad, h_pad), jnp.float32)),
        grid_spec=pltpu.PrefetchScalarGridSpec(
            num_scalar_prefetch=0,
            grid=(num_i // ti,),
            in_specs=[
                pl.BlockSpec((ti, b_pad, h_pad), lambda t: (t, 0, 0)),
                pl.BlockSpec((h_pad, c_pad), lambda t: (0, 0)),
                pl.BlockSpec((1, c_pad), lambda t: (0, 0)),
            ],
            out_specs=(pl.BlockSpec((b_pad, c_pad), lambda t: (0, 0)),
                       pl.BlockSpec((b_pad, h_pad), lambda t: (0, 0))),
            scratch_shapes=[pltpu.VMEM((b_pad, h_pad), jnp.float32)],
        ),
        compiler_params=pltpu.CompilerParams(
            dimension_semantics=("arbitrary",)),
    )(pool_parts, w2_p, b2_p)

    return logits_p[:num_graphs, :classes], pooled_p[:num_graphs, :hidden]


# ------------------------------- example run ---------------------------------
if __name__ == "__main__":
    # cfg: feature_size=16, hidden_channels=32, classes=4
    N_NODES = 32          # 2 graphs x 16 nodes
    FEATS = 16
    HIDDEN = 32
    CLASSES = 4
    NUM_GRAPHS = 2

    key = jax.random.PRNGKey(0)
    kx, ke, kw1, kb1, kw2, kb2 = jax.random.split(key, 6)

    # node features
    x = jax.random.normal(kx, (N_NODES, FEATS), dtype=jnp.float32)

    # simple deterministic undirected edges: ring within each graph of 16 nodes
    src_list, dst_list = [], []
    for g in range(NUM_GRAPHS):
        base = g * 16
        for i in range(16):
            a = base + i
            b = base + (i + 1) % 16
            src_list += [a, b]
            dst_list += [b, a]
    edge_index = jnp.array([src_list, dst_list], dtype=jnp.int32)

    batch = jnp.array([g for g in range(NUM_GRAPHS) for _ in range(16)],
                      dtype=jnp.int32)

    # deterministic parameter init (synthetic; not a checkpoint load)
    w1 = jax.random.normal(kw1, (FEATS, HIDDEN), dtype=jnp.float32) * 0.1
    b1 = jax.random.normal(kb1, (HIDDEN,), dtype=jnp.float32) * 0.01
    w2 = jax.random.normal(kw2, (HIDDEN, CLASSES), dtype=jnp.float32) * 0.1
    b2 = jax.random.normal(kb2, (CLASSES,), dtype=jnp.float32) * 0.01
    params = (w1, b1, w2, b2)

    logits, pooled = gcn_forward(x, edge_index, batch, params, NUM_GRAPHS)
    jax.block_until_ready((logits, pooled))

    assert logits.shape == (NUM_GRAPHS, CLASSES)
    assert pooled.shape == (NUM_GRAPHS, HIDDEN)
    assert bool(jnp.all(jnp.isfinite(logits)))
    assert bool(jnp.all(jnp.isfinite(pooled)))
    print("KERNEL_OK")
</pallas_src>

<mosaic_0001>
module attributes {stable_mosaic.version = 11 : i64} {
  func.func private @main(%arg0: i32) attributes {dimension_semantics = [#tpu.dimension_semantics<core_parallel>], iteration_bounds = array<i64: 2>, tpu.core_type = #tpu.core_type<sc_scalar_subcore>, window_params = []} {
    return
  }
}

module attributes {stable_mosaic.version = 11 : i64} {
  func.func private @main(%arg0: i32) attributes {dimension_semantics = [#tpu.dimension_semantics<core_parallel>], iteration_bounds = array<i64: 2>, tpu.core_type = #tpu.core_type<sc_scalar_subcore>, window_params = []} {
    return
  }
}

module attributes {stable_mosaic.version = 11 : i64} {
  func.func @gcn_head_kernel(%arg0: i32, %arg1: memref<1x8x128xf32, #tpu.memory_space<vmem>>, %arg2: memref<128x128xf32, #tpu.memory_space<vmem>>, %arg3: memref<1x128xf32, #tpu.memory_space<vmem>>, %arg4: memref<8x128xf32, #tpu.memory_space<vmem>>, %arg5: memref<8x128xf32, #tpu.memory_space<vmem>>, %arg6: memref<8x128xf32, #tpu.memory_space<vmem>>) attributes {dimension_semantics = [#tpu.dimension_semantics<arbitrary>], iteration_bounds = array<i64: 1>, scalar_prefetch = 0 : i64, scratch_operands = 1 : i64, tpu.core_type = #tpu.core_type<tc>, window_params = [{transform_indices = @transform_0, window_bounds = array<i64: 1, 8, 128>}, {pipeline_mode = #tpu.pipeline_mode<synchronous>, transform_indices = @transform_1, window_bounds = array<i64: 128, 128>}, {pipeline_mode = #tpu.pipeline_mode<synchronous>, transform_indices = @transform_2, window_bounds = array<i64: 1, 128>}, {pipeline_mode = #tpu.pipeline_mode<synchronous>, transform_indices = @transform_3, window_bounds = array<i64: 8, 128>}, {pipeline_mode = #tpu.pipeline_mode<synchronous>, transform_indices = @transform_4, window_bounds = array<i64: 8, 128>}]} {
    %c0_i32 = arith.constant 0 : i32
    %0 = arith.cmpi eq, %arg0, %c0_i32 : i32
    %1 = arith.extui %0 : i1 to i32
    %c0_i32_0 = arith.constant 0 : i32
    %2 = arith.cmpi ne, %1, %c0_i32_0 : i32
    scf.if %2 {
      %cst_9 = arith.constant 0xFF800000 : f32
      %11 = vector.broadcast %cst_9 : f32 to vector<8x128xf32>
      %c0_10 = arith.constant 0 : index
      %c0_11 = arith.constant 0 : index
      %12 = vector.load %arg6[%c0_10, %c0_11] : memref<8x128xf32, #tpu.memory_space<vmem>>, vector<8x128xf32>
      tpu.vector_store %arg6[%c0_10, %c0_11], %11 {strides = array<i32>} : memref<8x128xf32, #tpu.memory_space<vmem>>, vector<8x128xf32>,
    } else {
    }
    %c0 = arith.constant 0 : index
    %c0_1 = arith.constant 0 : index
    %3 = vector.load %arg6[%c0, %c0_1] : memref<8x128xf32, #tpu.memory_space<vmem>>, vector<8x128xf32>
    %c0_2 = arith.constant 0 : index
    %c0_3 = arith.constant 0 : index
    %c0_4 = arith.constant 0 : index
    %4 = vector.load %arg1[%c0_2, %c0_3, %c0_4] : memref<1x8x128xf32, #tpu.memory_space<vmem>>, vector<1x8x128xf32>
    %cst = arith.constant dense<0xFF800000> : vector<8x128xf32>
    %5 = vector.multi_reduction <maximumf>, %4, %cst [0] : vector<1x8x128xf32> to vector<8x128xf32>
    %6 = arith.maximumf %3, %5 : vector<8x128xf32>
    %c0_5 = arith.constant 0 : index
    %c0_6 = arith.constant 0 : index
    %7 = vector.load %arg6[%c0_5, %c0_6] : memref<8x128xf32, #tpu.memory_space<vmem>>, vector<8x128xf32>
    tpu.vector_store %arg6[%c0_5, %c0_6], %6 {strides = array<i32>} : memref<8x128xf32, #tpu.memory_space<vmem>>, vector<8x128xf32>,
    %c0_i32_7 = arith.constant 0 : i32
    %8 = arith.cmpi eq, %arg0, %c0_i32_7 : i32
    %9 = arith.extui %8 : i1 to i32
    %c0_i32_8 = arith.constant 0 : i32
    %10 = arith.cmpi ne, %9, %c0_i32_8 : i32
    scf.if %10 {
      %c0_9 = arith.constant 0 : index
      %c0_10 = arith.constant 0 : index
      %11 = vector.load %arg6[%c0_9, %c0_10] : memref<8x128xf32, #tpu.memory_space<vmem>>, vector<8x128xf32>
      %c0_11 = arith.constant 0 : index
      %c0_12 = arith.constant 0 : index
      %12 = vector.load %arg5[%c0_11, %c0_12] : memref<8x128xf32, #tpu.memory_space<vmem>>, vector<8x128xf32>
      tpu.vector_store %arg5[%c0_11, %c0_12], %11 {strides = array<i32>} : memref<8x128xf32, #tpu.memory_space<vmem>>, vector<8x128xf32>,
      %cst_13 = arith.constant 0xFF800000 : f32
      %13 = vector.broadcast %cst_13 : f32 to vector<8x128xf32>
      %14 = arith.cmpf ogt, %11, %13 : vector<8x128xf32>
      %cst_14 = arith.constant 0.000000e+00 : f32
      %15 = vector.broadcast %cst_14 : f32 to vector<8x128xf32>
      %16 = arith.select %14, %11, %15 : vector<8x128xi1>, vector<8x128xf32>
      %c0_15 = arith.constant 0 : index
      %c0_16 = arith.constant 0 : index
      %17 = vector.load %arg2[%c0_15, %c0_16] : memref<128x128xf32, #tpu.memory_space<vmem>>, vector<128x128xf32>
      %cst_17 = arith.constant dense<0.000000e+00> : vector<8x128xf32>
      %18 = tpu.matmul %16, %17, %cst_17 {dimension_numbers = #tpu.dot_dimension_numbers<[1], [0], [0], [1], [0, 0, 1, 1], [], []>} : vector<8x128xf32>, vector<128x128xf32>, vector<8x128xf32> -> vector<8x128xf32>
      %c0_18 = arith.constant 0 : index
      %c0_19 = arith.constant 0 : index
      %19 = vector.load %arg3[%c0_18, %c0_19] : memref<1x128xf32, #tpu.memory_space<vmem>>, vector<1x128xf32>
      %20 = vector.broadcast %19 : vector<1x128xf32> to vector<8x128xf32>
      %21 = arith.addf %18, %20 : vector<8x128xf32>
      %c0_20 = arith.constant 0 : index
      %c0_21 = arith.constant 0 : index
      %22 = vector.load %arg4[%c0_20, %c0_21] : memref<8x128xf32, #tpu.memory_space<vmem>>, vector<8x128xf32>
      tpu.vector_store %arg4[%c0_20, %c0_21], %21 {strides = array<i32>} : memref<8x128xf32, #tpu.memory_space<vmem>>, vector<8x128xf32>,
    } else {
    }
    return
  }
  func.func @transform_0(%arg0: i32) -> (i32, i32, i32) {
    %c0_i32 = arith.constant 0 : i32
    %c0_i32_0 = arith.constant 0 : i32
    %c0_i32_1 = arith.constant 0 : i32
    return %arg0, %c0_i32, %c0_i32_0 : i32, i32, i32
  }
  func.func @transform_1(%arg0: i32) -> (i32, i32) {
    %c0_i32 = arith.constant 0 : i32
    %c0_i32_0 = arith.constant 0 : i32
    %c0_i32_1 = arith.constant 0 : i32
    return %c0_i32, %c0_i32_0 : i32, i32
  }
  func.func @transform_2(%arg0: i32) -> (i32, i32) {
    %c0_i32 = arith.constant 0 : i32
    %c0_i32_0 = arith.constant 0 : i32
    %c0_i32_1 = arith.constant 0 : i32
    return %c0_i32, %c0_i32_0 : i32, i32
  }
  func.func @transform_3(%arg0: i32) -> (i32, i32) {
    %c0_i32 = arith.constant 0 : i32
    %c0_i32_0 = arith.constant 0 : i32
    %c0_i32_1 = arith.constant 0 : i32
    return %c0_i32, %c0_i32_0 : i32, i32
  }
  func.func @transform_4(%arg0: i32) -> (i32, i32) {
    %c0_i32 = arith.constant 0 : i32
    %c0_i32_0 = arith.constant 0 : i32
    %c0_i32_1 = arith.constant 0 : i32
    return %c0_i32, %c0_i32_0 : i32, i32
  }
}

module attributes {stable_mosaic.version = 11 : i64} {
  func.func @gcn_conv_pool_kernel(%arg0: i32, %arg1: i32, %arg2: memref<1xi32, #tpu.memory_space<smem>>, %arg3: memref<1xi32, #tpu.memory_space<smem>>, %arg4: memref<128x128xbf16, #tpu.memory_space<vmem>>, %arg5: memref<128x128xbf16, #tpu.memory_space<vmem>>, %arg6: memref<8x128xbf16, #tpu.memory_space<vmem>>, %arg7: memref<1x128xf32, #tpu.memory_space<vmem>>, %arg8: memref<128x1xi32, #tpu.memory_space<vmem>>, %arg9: memref<1x8x128xf32, #tpu.memory_space<vmem>>, %arg10: memref<128x128xf32, #tpu.memory_space<vmem>>) attributes {dimension_semantics = [#tpu.dimension_semantics<parallel>, #tpu.dimension_semantics<arbitrary>], iteration_bounds = array<i64: 1, 1>, scalar_prefetch = 2 : i64, scratch_operands = 1 : i64, tpu.core_type = #tpu.core_type<tc>, window_params = [{transform_indices = @transform_0, window_bounds = array<i64: 128, 128>}, {pipeline_mode = #tpu.pipeline_mode<synchronous>, transform_indices = @transform_1, window_bounds = array<i64: 128, 128>}, {pipeline_mode = #tpu.pipeline_mode<synchronous>, transform_indices = @transform_2, window_bounds = array<i64: 8, 128>}, {pipeline_mode = #tpu.pipeline_mode<synchronous>, transform_indices = @transform_3, window_bounds = array<i64: 1, 128>}, {transform_indices = @transform_4, window_bounds = array<i64: 128, 1>}, {transform_indices = @transform_5, window_bounds = array<i64: 1, 8, 128>}]} {
    %c0_i32 = arith.constant 0 : i32
    %0 = arith.cmpi eq, %arg1, %c0_i32 : i32
    %1 = arith.extui %0 : i1 to i32
    %c0_i32_0 = arith.constant 0 : i32
    %2 = arith.cmpi ne, %1, %c0_i32_0 : i32
    scf.if %2 {
      %cst = arith.constant 0.000000e+00 : f32
      %11 = vector.broadcast %cst : f32 to vector<128x128xf32>
      %c0 = arith.constant 0 : index
      %c0_4 = arith.constant 0 : index
      %12 = vector.load %arg10[%c0, %c0_4] : memref<128x128xf32, #tpu.memory_space<vmem>>, vector<128x128xf32>
      tpu.vector_store %arg10[%c0, %c0_4], %11 {strides = array<i32>} : memref<128x128xf32, #tpu.memory_space<vmem>>, vector<128x128xf32>,
    } else {
    }
    %3 = arith.index_cast %arg0 : i32 to index
    %4 = memref.load %arg3[%3] : memref<1xi32, #tpu.memory_space<smem>>
    %5 = arith.cmpi slt, %arg1, %4 : i32
    %6 = arith.extui %5 : i1 to i32
    %c0_i32_1 = arith.constant 0 : i32
    %7 = arith.cmpi ne, %6, %c0_i32_1 : i32
    scf.if %7 {
      %c1_i32 = arith.constant 1 : i32
      %11 = arith.muli %arg0, %c1_i32 : i32
      %12 = arith.addi %11, %arg1 : i32
      %13 = arith.index_cast %12 : i32 to index
      %14 = memref.load %arg2[%13] : memref<1xi32, #tpu.memory_space<smem>>
      %c128_i32 = arith.constant 128 : i32
      %15 = arith.muli %14, %c128_i32 : i32
      %16 = tpu.assume_multiple %15, 128 : i32
      %17 = arith.index_cast %16 : i32 to index
      %c0 = arith.constant 0 : index
      %18 = vector.load %arg5[%17, %c0] : memref<128x128xbf16, #tpu.memory_space<vmem>>, vector<128x128xbf16>
      %c0_4 = arith.constant 0 : index
      %c0_5 = arith.constant 0 : index
      %19 = vector.load %arg10[%c0_4, %c0_5] : memref<128x128xf32, #tpu.memory_space<vmem>>, vector<128x128xf32>
      %c0_6 = arith.constant 0 : index
      %c0_7 = arith.constant 0 : index
      %20 = vector.load %arg4[%c0_6, %c0_7] : memref<128x128xbf16, #tpu.memory_space<vmem>>, vector<128x128xbf16>
      %cst = arith.constant dense<0.000000e+00> : vector<128x128xf32>
      %21 = tpu.matmul %20, %18, %cst {dimension_numbers = #tpu.dot_dimension_numbers<[1], [0], [0], [1], [0, 0, 1, 1], [], []>} : vector<128x128xbf16>, vector<128x128xbf16>, vector<128x128xf32> -> vector<128x128xf32>
      %22 = arith.addf %19, %21 : vector<128x128xf32>
      %c0_8 = arith.constant 0 : index
      %c0_9 = arith.constant 0 : index
      %23 = vector.load %arg10[%c0_8, %c0_9] : memref<128x128xf32, #tpu.memory_space<vmem>>, vector<128x128xf32>
      tpu.vector_store %arg10[%c0_8, %c0_9], %22 {strides = array<i32>} : memref<128x128xf32, #tpu.memory_space<vmem>>, vector<128x128xf32>,
    } else {
    }
    %c0_i32_2 = arith.constant 0 : i32
    %8 = arith.cmpi eq, %arg1, %c0_i32_2 : i32
    %9 = arith.extui %8 : i1 to i32
    %c0_i32_3 = arith.constant 0 : i32
    %10 = arith.cmpi ne, %9, %c0_i32_3 : i32
    scf.if %10 {
      %c0 = arith.constant 0 : index
      %c0_4 = arith.constant 0 : index
      %11 = vector.load %arg10[%c0, %c0_4] : memref<128x128xf32, #tpu.memory_space<vmem>>, vector<128x128xf32>
      %c0_5 = arith.constant 0 : index
      %c0_6 = arith.constant 0 : index
      %12 = vector.load %arg7[%c0_5, %c0_6] : memref<1x128xf32, #tpu.memory_space<vmem>>, vector<1x128xf32>
      %13 = vector.broadcast %12 : vector<1x128xf32> to vector<128x128xf32>
      %14 = arith.addf %11, %13 : vector<128x128xf32>
      %cst = arith.constant 0.000000e+00 : f32
      %15 = vector.broadcast %cst : f32 to vector<128x128xf32>
      %16 = arith.cmpf ogt, %14, %15 : vector<128x128xf32>
      %cst_7 = arith.constant 0.00999999977 : f32
      %17 = vector.broadcast %cst_7 : f32 to vector<128x128xf32>
      %18 = arith.mulf %17, %14 : vector<128x128xf32>
      %19 = arith.select %16, %14, %18 : vector<128x128xi1>, vector<128x128xf32>
      %c0_8 = arith.constant 0 : index
      %c0_9 = arith.constant 0 : index
      %20 = vector.load %arg8[%c0_8, %c0_9] : memref<128x1xi32, #tpu.memory_space<vmem>>, vector<128x1xi32>
      %c0_i32_10 = arith.constant 0 : i32
      %21 = vector.broadcast %c0_i32_10 : i32 to vector<128x1xi32>
      %22 = arith.cmpi eq, %20, %21 : vector<128x1xi32>
      %cst_11 = arith.constant 0xFF800000 : f32
      %23 = vector.shape_cast %22 : vector<128x1xi1> to vector<128x1xi1>
      %24 = vector.broadcast %23 : vector<128x1xi1> to vector<128x128xi1>
      %25 = vector.broadcast %cst_11 : f32 to vector<128x128xf32>
      %26 = arith.select %24, %19, %25 : vector<128x128xi1>, vector<128x128xf32>
      %cst_12 = arith.constant dense<0xFF800000> : vector<128xf32>
      %27 = vector.multi_reduction <maximumf>, %26, %cst_12 [0] : vector<128x128xf32> to vector<128xf32>
      %28 = vector.shape_cast %27 : vector<128xf32> to vector<1x128xf32>
      %c1_i32 = arith.constant 1 : i32
      %29 = vector.broadcast %c1_i32 : i32 to vector<128x1xi32>
      %30 = arith.cmpi eq, %20, %29 : vector<128x1xi32>
      %cst_13 = arith.constant 0xFF800000 : f32
      %31 = vector.shape_cast %30 : vector<128x1xi1> to vector<128x1xi1>
      %32 = vector.broadcast %31 : vector<128x1xi1> to vector<128x128xi1>
      %33 = vector.broadcast %cst_13 : f32 to vector<128x128xf32>
      %34 = arith.select %32, %19, %33 : vector<128x128xi1>, vector<128x128xf32>
      %cst_14 = arith.constant dense<0xFF800000> : vector<128xf32>
      %35 = vector.multi_reduction <maximumf>, %34, %cst_14 [0] : vector<128x128xf32> to vector<128xf32>
      %36 = vector.shape_cast %35 : vector<128xf32> to vector<1x128xf32>
      %c2_i32 = arith.constant 2 : i32
      %37 = vector.broadcast %c2_i32 : i32 to vector<128x1xi32>
      %38 = arith.cmpi eq, %20, %37 : vector<128x1xi32>
      %cst_15 = arith.constant 0xFF800000 : f32
      %39 = vector.shape_cast %38 : vector<128x1xi1> to vector<128x1xi1>
      %40 = vector.broadcast %39 : vector<128x1xi1> to vector<128x128xi1>
      %41 = vector.broadcast %cst_15 : f32 to vector<128x128xf32>
      %42 = arith.select %40, %19, %41 : vector<128x128xi1>, vector<128x128xf32>
      %cst_16 = arith.constant dense<0xFF800000> : vector<128xf32>
      %43 = vector.multi_reduction <maximumf>, %42, %cst_16 [0] : vector<128x128xf32> to vector<128xf32>
      %44 = vector.shape_cast %43 : vector<128xf32> to vector<1x128xf32>
      %c3_i32 = arith.constant 3 : i32
      %45 = vector.broadcast %c3_i32 : i32 to vector<128x1xi32>
      %46 = arith.cmpi eq, %20, %45 : vector<128x1xi32>
      %cst_17 = arith.constant 0xFF800000 : f32
      %47 = vector.shape_cast %46 : vector<128x1xi1> to vector<128x1xi1>
      %48 = vector.broadcast %47 : vector<128x1xi1> to vector<128x128xi1>
      %49 = vector.broadcast %cst_17 : f32 to vector<128x128xf32>
      %50 = arith.select %48, %19, %49 : vector<128x128xi1>, vector<128x128xf32>
      %cst_18 = arith.constant dense<0xFF800000> : vector<128xf32>
      %51 = vector.multi_reduction <maximumf>, %50, %cst_18 [0] : vector<128x128xf32> to vector<128xf32>
      %52 = vector.shape_cast %51 : vector<128xf32> to vector<1x128xf32>
      %c4_i32 = arith.constant 4 : i32
      %53 = vector.broadcast %c4_i32 : i32 to vector<128x1xi32>
      %54 = arith.cmpi eq, %20, %53 : vector<128x1xi32>
      %cst_19 = arith.constant 0xFF800000 : f32
      %55 = vector.shape_cast %54 : vector<128x1xi1> to vector<128x1xi1>
      %56 = vector.broadcast %55 : vector<128x1xi1> to vector<128x128xi1>
      %57 = vector.broadcast %cst_19 : f32 to vector<128x128xf32>
      %58 = arith.select %56, %19, %57 : vector<128x128xi1>, vector<128x128xf32>
      %cst_20 = arith.constant dense<0xFF800000> : vector<128xf32>
      %59 = vector.multi_reduction <maximumf>, %58, %cst_20 [0] : vector<128x128xf32> to vector<128xf32>
      %60 = vector.shape_cast %59 : vector<128xf32> to vector<1x128xf32>
      %c5_i32 = arith.constant 5 : i32
      %61 = vector.broadcast %c5_i32 : i32 to vector<128x1xi32>
      %62 = arith.cmpi eq, %20, %61 : vector<128x1xi32>
      %cst_21 = arith.constant 0xFF800000 : f32
      %63 = vector.shape_cast %62 : vector<128x1xi1> to vector<128x1xi1>
      %64 = vector.broadcast %63 : vector<128x1xi1> to vector<128x128xi1>
      %65 = vector.broadcast %cst_21 : f32 to vector<128x128xf32>
      %66 = arith.select %64, %19, %65 : vector<128x128xi1>, vector<128x128xf32>
      %cst_22 = arith.constant dense<0xFF800000> : vector<128xf32>
      %67 = vector.multi_reduction <maximumf>, %66, %cst_22 [0] : vector<128x128xf32> to vector<128xf32>
      %68 = vector.shape_cast %67 : vector<128xf32> to vector<1x128xf32>
      %c6_i32 = arith.constant 6 : i32
      %69 = vector.broadcast %c6_i32 : i32 to vector<128x1xi32>
      %70 = arith.cmpi eq, %20, %69 : vector<128x1xi32>
      %cst_23 = arith.constant 0xFF800000 : f32
      %71 = vector.shape_cast %70 : vector<128x1xi1> to vector<128x1xi1>
      %72 = vector.broadcast %71 : vector<128x1xi1> to vector<128x128xi1>
      %73 = vector.broadcast %cst_23 : f32 to vector<128x128xf32>
      %74 = arith.select %72, %19, %73 : vector<128x128xi1>, vector<128x128xf32>
      %cst_24 = arith.constant dense<0xFF800000> : vector<128xf32>
      %75 = vector.multi_reduction <maximumf>, %74, %cst_24 [0] : vector<128x128xf32> to vector<128xf32>
      %76 = vector.shape_cast %75 : vector<128xf32> to vector<1x128xf32>
      %c7_i32 = arith.constant 7 : i32
      %77 = vector.broadcast %c7_i32 : i32 to vector<128x1xi32>
      %78 = arith.cmpi eq, %20, %77 : vector<128x1xi32>
      %cst_25 = arith.constant 0xFF800000 : f32
      %79 = vector.shape_cast %78 : vector<128x1xi1> to vector<128x1xi1>
      %80 = vector.broadcast %79 : vector<128x1xi1> to vector<128x128xi1>
      %81 = vector.broadcast %cst_25 : f32 to vector<128x128xf32>
      %82 = arith.select %80, %19, %81 : vector<128x128xi1>, vector<128x128xf32>
      %cst_26 = arith.constant dense<0xFF800000> : vector<128xf32>
      %83 = vector.multi_reduction <maximumf>, %82, %cst_26 [0] : vector<128x128xf32> to vector<128xf32>
      %84 = vector.shape_cast %83 : vector<128xf32> to vector<1x128xf32>
      %85 = tpu.concatenate %28, %36, %44, %52, %60, %68, %76, %84 in 0 : vector<1x128xf32>, vector<1x128xf32>, vector<1x128xf32>, vector<1x128xf32>, vector<1x128xf32>, vector<1x128xf32>, vector<1x128xf32>, vector<1x128xf32> -> vector<8x128xf32>
      %86 = vector.shape_cast %85 : vector<8x128xf32> to vector<1x8x128xf32>
      %c0_27 = arith.constant 0 : index
      %c0_28 = arith.constant 0 : index
      %c0_29 = arith.constant 0 : index
      %87 = vector.load %arg9[%c0_27, %c0_28, %c0_29] : memref<1x8x128xf32, #tpu.memory_space<vmem>>, vector<1x8x128xf32>
      tpu.vector_store %arg9[%c0_27, %c0_28, %c0_29], %86 {strides = array<i32>} : memref<1x8x128xf32, #tpu.memory_space<vmem>>, vector<1x8x128xf32>,
    } else {
    }
    return
  }
  func.func @transform_0(%arg0: i32, %arg1: i32, %arg2: memref<1xi32, #tpu.memory_space<smem>>, %arg3: memref<1xi32, #tpu.memory_space<smem>>) -> (i32, i32) {
    %c1_i32 = arith.constant 1 : i32
    %0 = arith.muli %arg0, %c1_i32 : i32
    %1 = arith.addi %0, %arg1 : i32
    %2 = arith.index_cast %1 : i32 to index
    %3 = memref.load %arg2[%2] : memref<1xi32, #tpu.memory_space<smem>>
    %c0_i32 = arith.constant 0 : i32
    return %arg0, %3 : i32, i32
  }
  func.func @transform_1(%arg0: i32, %arg1: i32, %arg2: memref<1xi32, #tpu.memory_space<smem>>, %arg3: memref<1xi32, #tpu.memory_space<smem>>) -> (i32, i32) {
    %c0_i32 = arith.constant 0 : i32
    %c0_i32_0 = arith.constant 0 : i32
    %c0_i32_1 = arith.constant 0 : i32
    return %c0_i32, %c0_i32_0 : i32, i32
  }
  func.func @transform_2(%arg0: i32, %arg1: i32, %arg2: memref<1xi32, #tpu.memory_space<smem>>, %arg3: memref<1xi32, #tpu.memory_space<smem>>) -> (i32, i32) {
    %c0_i32 = arith.constant 0 : i32
    %c0_i32_0 = arith.constant 0 : i32
    %c0_i32_1 = arith.constant 0 : i32
    return %c0_i32, %c0_i32_0 : i32, i32
  }
  func.func @transform_3(%arg0: i32, %arg1: i32, %arg2: memref<1xi32, #tpu.memory_space<smem>>, %arg3: memref<1xi32, #tpu.memory_space<smem>>) -> (i32, i32) {
    %c0_i32 = arith.constant 0 : i32
    %c0_i32_0 = arith.constant 0 : i32
    %c0_i32_1 = arith.constant 0 : i32
    return %c0_i32, %c0_i32_0 : i32, i32
  }
  func.func @transform_4(%arg0: i32, %arg1: i32, %arg2: memref<1xi32, #tpu.memory_space<smem>>, %arg3: memref<1xi32, #tpu.memory_space<smem>>) -> (i32, i32) {
    %c0_i32 = arith.constant 0 : i32
    %c0_i32_0 = arith.constant 0 : i32
    return %arg0, %c0_i32 : i32, i32
  }
  func.func @transform_5(%arg0: i32, %arg1: i32, %arg2: memref<1xi32, #tpu.memory_space<smem>>, %arg3: memref<1xi32, #tpu.memory_space<smem>>) -> (i32, i32, i32) {
    %c0_i32 = arith.constant 0 : i32
    %c0_i32_0 = arith.constant 0 : i32
    %c0_i32_1 = arith.constant 0 : i32
    return %arg0, %c0_i32, %c0_i32_0 : i32, i32, i32
  }
}

</mosaic_0001>

<bundles_post_ra>
// kernel: gcn_forward.3
= control target key start
LH: loop header
LB: loop body
LE: loop exit
PB: predicated region body
PF: predicated region fallthrough
CT: control target
= control target key end

     0   :  { %v215_v0 = vmov 0.0|0.0   ;;  %vm216_vm0 = vmmov 0   ;;  %v217_v4 = vmov 0.0   ;;  %s303_s1 = inlined_call_operand.vmem [shape: f32[128,128], index: 1, kind: input, shape index: {}]   ;;  %s304_s0 = inlined_call_operand.vmem [shape: f32[1,8,128], index: 0, kind: input, shape index: {}]   ;;  %s305_s4 = inlined_call_operand.vmem [shape: f32[8,128], index: 4, kind: output, shape index: {1}]   ;;  %s306_s2 = inlined_call_operand.vmem [shape: f32[1,128], index: 2, kind: input, shape index: {}]   ;;  %s307_s3 = inlined_call_operand.vmem [shape: f32[8,128], index: 3, kind: output, shape index: {0}]  }
   0x1   :  { %188 = vmatprep.subr.bf16.mxu0 %v215_v0  ;;  %v32_v1 = vld [vmem:[%s303_s1] sm:$0xff]  ;;  %v33_v2 = vld [vmem:[%s303_s1 + $0x8] sm:$0xff]  ;;  %v34_v3 = vld [vmem:[%s303_s1 + $0x10] sm:$0xff]  ;;  %185 = vmatprep.mubr.msk.f32.mxu0 %vm216_vm0, %v217_v4 }
   0x2   :  { %v189_v5 = vpack.c.bf16 %v33_v2, %v32_v1  ;;  %v35_v6 = vld [vmem:[%s303_s1 + $0x18] sm:$0xff]  ;;  %v36_v8 = vld [vmem:[%s303_s1 + $0x20] sm:$0xff]  ;;  %v37_v9 = vld [vmem:[%s303_s1 + $0x28] sm:$0xff] }
   0x3   :  { %v192_v7 = vpack.c.bf16 %v35_v6, %v34_v3  ;;  %v22_v10 = vld [vmem:[%s304_s0] sm:$0xff]  ;;  %v195_v11 = vpack.c.bf16 %v37_v9, %v36_v8  ;;  %v38_v12 = vld [vmem:[%s303_s1 + $0x30] sm:$0xff]  ;;  %v39_v13 = vld [vmem:[%s303_s1 + $0x38] sm:$0xff] }
   0x4   :  { %190 = vmatpush3.bf16.msra.mxu0 %v189_v5  ;;  %29 = vst [vmem:[%s305_s4] sm:$0xff] %v22_v10  ;;  %v198_v14 = vpack.c.bf16 %v39_v13, %v38_v12  ;;  %v40_v15 = vld [vmem:[%s303_s1 + $0x40] sm:$0xff]  ;;  %v41_v16 = vld [vmem:[%s303_s1 + $0x48] sm:$0xff]  ;;  %v42_v18 = vld [vmem:[%s303_s1 + $0x50] sm:$0xff]  ;;  %vm30_vm1 = vcmp.gt.f32.partialorder %v22_v10, -inf }
   0x5   :  { %191 = vmatprep.subr.bf16.mxu0 %v215_v0  ;;  %v201_v17 = vpack.c.bf16 %v41_v16, %v40_v15  ;;  %v43_v19 = vld [vmem:[%s303_s1 + $0x58] sm:$0xff]  ;;  %v44_v21 = vld [vmem:[%s303_s1 + $0x60] sm:$0xff]  ;;  %v45_v22 = vld [vmem:[%s303_s1 + $0x68] sm:$0xff] }
   0x6   :  { %v204_v20 = vpack.c.bf16 %v43_v19, %v42_v18  ;;  %v207_v23 = vpack.c.bf16 %v45_v22, %v44_v21  ;;  %v46_v24 = vld [vmem:[%s303_s1 + $0x70] sm:$0xff]  ;;  %v47_v25 = vld [vmem:[%s303_s1 + $0x78] sm:$0xff]  ;;  %v134_v27 = vld [vmem:[%s306_s2] ss:$0 sm:$0xff] }
   0x7   :  { %v210_v26 = vpack.c.bf16 %v47_v25, %v46_v24 }
   0x8   :  { %193 = vmatpush3.bf16.msra.mxu0 %v192_v7 }
   0x9   :  { %194 = vmatprep.subr.bf16.mxu0 %v215_v0 }
   0xc   :  { %196 = vmatpush3.bf16.msra.mxu0 %v195_v11 }
   0xd   :  { %197 = vmatprep.subr.bf16.mxu0 %v215_v0 }
  0x10   :  { %199 = vmatpush3.bf16.msra.mxu0 %v198_v14 }
  0x11   :  { %200 = vmatprep.subr.bf16.mxu0 %v215_v0 }
  0x14   :  { %202 = vmatpush3.bf16.msra.mxu0 %v201_v17 }
  0x15   :  { %203 = vmatprep.subr.bf16.mxu0 %v215_v0 }
  0x18   :  { %205 = vmatpush3.bf16.msra.mxu0 %v204_v20 }
  0x19   :  { %206 = vmatprep.subr.bf16.mxu0 %v215_v0 }
  0x1c   :  { %208 = vmatpush3.bf16.msra.mxu0 %v207_v23 }
  0x1d   :  { %209 = vmatprep.subr.bf16.mxu0 %v215_v0 }
  0x20   :  { %211 = vmatpush3.bf16.msra.mxu0 %v210_v26 }
  0x23   :  { %186 = vmatmul.mubr.msk.f32.vlgmr.msra.gmra.mrb[0].mxu0 %vm30_vm1, %v22_v10 }
  0xf6   :  { %v121_v28 = vpop.f32.mrb[0].mxu0 }
  0xf7   :  { %v122_v29 = vadd.f32 %v134_v27, %v121_v28  ;;  %v187_v30 = vpop.f32.mrb[1].mxu0 }
  0xf9   :  { %125 = vst [vmem:[%s307_s3] sm:$0xff] %v122_v29 }

// kernel: gcn_forward.2
= control target key start
LH: loop header
LB: loop body
LE: loop exit
PB: predicated region body
PF: predicated region fallthrough
CT: control target
= control target key end

     0   :  { %v1671_v0 = vmov 0.0   ;;  %s2569_s0 = inlined_call_operand.<no memory space> [shape: s32[1], index: 0, kind: input, shape index: {}]   ;;  %s2570_s1 = inlined_call_operand.<no memory space> [shape: s32[1], index: 1, kind: input, shape index: {}]   ;;  %s2571_s3 = inlined_call_operand.vmem [shape: bf16[128,128], index: 3, kind: input, shape index: {}]   ;;  %s2572_s4 = inlined_call_operand.vmem [shape: bf16[8,128], index: 4, kind: input, shape index: {}]   ;;  %s2573_s5 = inlined_call_operand.vmem [shape: f32[1,128], index: 5, kind: input, shape index: {}]   ;;  %s2574_s6 = inlined_call_operand.vmem [shape: s32[128,1], index: 6, kind: input, shape index: {}]   ;;  %s2575_s7 = inlined_call_operand.vmem [shape: f32[1,8,128], index: 7, kind: output, shape index: {}]   ;;  %s2576_s2 = inlined_call_operand.vmem [shape: bf16[128,128], index: 2, kind: input, shape index: {}]  }
   0x1   :  { %12 = sst [smem:[#allocation4]] %s2569_s0  ;;  %p40_p0 = scmp.lt.s32.totalorder %s2569_s0, 0  ;;  %51 = vst [vmem:[#allocation2] sm:$0xff] %v1671_v0  ;;  %52 = vst [vmem:[#allocation2 + $0x8] sm:$0xff] %v1671_v0 }
   0x2   :  { %53 = vst [vmem:[#allocation2 + $0x10] sm:$0xff] %v1671_v0  ;;  %54 = vst [vmem:[#allocation2 + $0x18] sm:$0xff] %v1671_v0  ;;  %p1551_p1 = scmp.le.s32.totalorder %s2570_s1, 0 }
   0x3   :  { %55 = vst [vmem:[#allocation2 + $0x20] sm:$0xff] %v1671_v0  ;;  %56 = vst [vmem:[#allocation2 + $0x28] sm:$0xff] %v1671_v0  ;;  %s2587_s0 = smov (!%p40_p0, %s2569_s0), 0  ;;  %s73_s14 = sld [smem:[#allocation4]] (!%p1551_p1) }
   0x4   :  { %57 = vst [vmem:[#allocation2 + $0x30] sm:$0xff] %v1671_v0  ;;  %58 = vst [vmem:[#allocation2 + $0x38] sm:$0xff] %v1671_v0  ;;  %s1549_s8 = sshll.u32 %s2587_s0, 2  ;;  %71 = sbr.rel (%p1551_p1) target bundleno = 272 (0x110), region = 29 }
   0x5   :  { %59 = vst [vmem:[#allocation2 + $0x40] sm:$0xff] %v1671_v0  ;;  %60 = vst [vmem:[#allocation2 + $0x48] sm:$0xff] %v1671_v0  ;;  %s1729_s11 = scalar_lea.vmem %s2576_s2, %s1549_s8 }
   0x6   :  { %61 = vst [vmem:[#allocation2 + $0x50] sm:$0xff] %v1671_v0  ;;  %62 = vst [vmem:[#allocation2 + $0x58] sm:$0xff] %v1671_v0  ;;  %v1645_v1 = vld [vmem:[%s1729_s11] sm:$0xff] (!%p1551_p1)   ;;  %v1647_v11 = vld [vmem:[%s1729_s11 + $0x8] sm:$0xff] (!%p1551_p1)  }
   0x7   :  { %63 = vst [vmem:[#allocation2 + $0x60] sm:$0xff] %v1671_v0  ;;  %64 = vst [vmem:[#allocation2 + $0x68] sm:$0xff] %v1671_v0  ;;  %v1646_v2 = vld [vmem:[%s1729_s11 + $0x20] sm:$0xff] (!%p1551_p1)   ;;  %1603 = vmatprep.mubr.bf16.mxu0 (!%p1551_p1), %v1645_v1  ;;  %v1648_v12 = vld [vmem:[%s1729_s11 + $0x28] sm:$0xff] (!%p1551_p1)  }
   0x8   :  { %65 = vst [vmem:[#allocation2 + $0x70] sm:$0xff] %v1671_v0  ;;  %66 = vst [vmem:[#allocation2 + $0x78] sm:$0xff] %v1671_v0  ;;  %1611 = vmatprep.mubr.bf16.mxu1 (!%p1551_p1), %v1646_v2  ;;  %v1649_v13 = vld [vmem:[%s1729_s11 + $0x10] sm:$0xff] (!%p1551_p1)   ;;  %v1651_v15 = vld [vmem:[%s1729_s11 + $0x18] sm:$0xff] (!%p1551_p1)  }
   0x9   :  { %s1552_s15 = sshll.u32 (!%p1551_p1), %s73_s14, 7  ;;  %v1650_v14 = vld [vmem:[%s1729_s11 + $0x30] sm:$0xff] (!%p1551_p1)   ;;  %v1652_v16 = vld [vmem:[%s1729_s11 + $0x38] sm:$0xff] (!%p1551_p1)   ;;  %v97_v17 = vld [vmem:[#allocation2 + $0x10] sm:$0xff] (!%p1551_p1) }
   0xa   :  { %s75_s16 = sshra.s32 (!%p1551_p1), %s1552_s15, 3  ;;  %v95_v19 = vld [vmem:[#allocation2] sm:$0xff] (!%p1551_p1)  ;;  %v98_v23 = vld [vmem:[#allocation2 + $0x18] sm:$0xff] (!%p1551_p1)  ;;  %v96_v29 = vld [vmem:[#allocation2 + $0x8] sm:$0xff] (!%p1551_p1) }
   0xb   :  { %s1553_s0 = sshll.u32 %s75_s16, 2  ;;  %v101_v41 = vld [vmem:[#allocation2 + $0x30] sm:$0xff]  ;;  %v99_v43 = vld [vmem:[#allocation2 + $0x20] sm:$0xff]  ;;  %v102_v47 = vld [vmem:[#allocation2 + $0x38] sm:$0xff] }
   0xc   :  { %s1739_s2 = scalar_lea.vmem %s2571_s3, %s1553_s0  ;;  %v103_v20 = vld [vmem:[#allocation2 + $0x40] sm:$0xff]  ;;  %v104_v30 = vld [vmem:[#allocation2 + $0x48] sm:$0xff] }
   0xd   :  { %v1637_v3 = vld [vmem:[%s1739_s2] sm:$0xff]   ;;  %v1638_v4 = vld [vmem:[%s1739_s2 + $0x8] sm:$0xff]   ;;  %v1639_v5 = vld [vmem:[%s1739_s2 + $0x10] sm:$0xff]  }
   0xe   :  { %1587 = vmatprep.subr.bf16.mxu0 %v1637_v3  ;;  %1619 = vmatprep.subr.bf16.mxu1 %v1637_v3  ;;  %v1640_v6 = vld [vmem:[%s1739_s2 + $0x18] sm:$0xff]   ;;  %v1641_v7 = vld [vmem:[%s1739_s2 + $0x20] sm:$0xff]   ;;  %v1642_v8 = vld [vmem:[%s1739_s2 + $0x28] sm:$0xff]  }
   0xf   :  { %1588 = vmatpush3.bf16.msra.mxu0 %v1637_v3  ;;  %1627 = vmatpush3.bf16.msra.mxu1 %v1637_v3  ;;  %v1643_v9 = vld [vmem:[%s1739_s2 + $0x30] sm:$0xff]   ;;  %v1644_v10 = vld [vmem:[%s1739_s2 + $0x38] sm:$0xff]   ;;  %v105_v18 = vld [vmem:[#allocation2 + $0x50] sm:$0xff] }
  0x10   :  { %1589 = vmatprep.subr.bf16.mxu0 %v1638_v4  ;;  %1620 = vmatprep.subr.bf16.mxu1 %v1638_v4  ;;  %v106_v24 = vld [vmem:[#allocation2 + $0x58] sm:$0xff]  ;;  %v109_v42 = vld [vmem:[#allocation2 + $0x70] sm:$0xff]  ;;  %v107_v44 = vld [vmem:[#allocation2 + $0x60] sm:$0xff] }
  0x11   :  { %v110_v48 = vld [vmem:[#allocation2 + $0x78] sm:$0xff]  ;;  %v100_v53 = vld [vmem:[#allocation2 + $0x28] sm:$0xff] }
  0x12   :  { %v108_v54 = vld [vmem:[#allocation2 + $0x68] sm:$0xff] }
  0x13   :  { %1590 = vmatpush3.bf16.msra.mxu0 %v1638_v4  ;;  %1628 = vmatpush3.bf16.msra.mxu1 %v1638_v4 }
  0x14   :  { %1591 = vmatprep.subr.bf16.mxu0 %v1639_v5  ;;  %1621 = vmatprep.subr.bf16.mxu1 %v1639_v5 }
  0x17   :  { %1592 = vmatpush3.bf16.msra.mxu0 %v1639_v5  ;;  %1629 = vmatpush3.bf16.msra.mxu1 %v1639_v5 }
  0x18   :  { %1593 = vmatprep.subr.bf16.mxu0 %v1640_v6  ;;  %1622 = vmatprep.subr.bf16.mxu1 %v1640_v6 }
  0x1b   :  { %1594 = vmatpush3.bf16.msra.mxu0 %v1640_v6  ;;  %1630 = vmatpush3.bf16.msra.mxu1 %v1640_v6 }
  0x1c   :  { %1595 = vmatprep.subr.bf16.mxu0 %v1641_v7  ;;  %1623 = vmatprep.subr.bf16.mxu1 %v1641_v7 }
  0x1f   :  { %1596 = vmatpush3.bf16.msra.mxu0 %v1641_v7  ;;  %1631 = vmatpush3.bf16.msra.mxu1 %v1641_v7 }
  0x20   :  { %1597 = vmatprep.subr.bf16.mxu0 %v1642_v8  ;;  %1624 = vmatprep.subr.bf16.mxu1 %v1642_v8 }
  0x23   :  { %1598 = vmatpush3.bf16.msra.mxu0 %v1642_v8  ;;  %1632 = vmatpush3.bf16.msra.mxu1 %v1642_v8 }
  0x24   :  { %1599 = vmatprep.subr.bf16.mxu0 %v1643_v9  ;;  %1625 = vmatprep.subr.bf16.mxu1 %v1643_v9 }
  0x27   :  { %1600 = vmatpush3.bf16.msra.mxu0 %v1643_v9  ;;  %1633 = vmatpush3.bf16.msra.mxu1 %v1643_v9 }
  0x28   :  { %1601 = vmatprep.subr.bf16.mxu0 %v1644_v10  ;;  %1626 = vmatprep.subr.bf16.mxu1 %v1644_v10 }
  0x2b   :  { %1602 = vmatpush3.bf16.msra.mxu0 %v1644_v10  ;;  %1634 = vmatpush3.bf16.msra.mxu1 %v1644_v10 }
  0x2e   :  { %1604 = vmatmul.mubr.bf16.vlgmr.msra.gmra.mrb[0].mxu0 %v1647_v11  ;;  %1612 = vmatmul.mubr.bf16.vlgmr.msra.gmra.mrb[0].mxu1 %v1648_v12 }
  0x2f   :  { %1607 = vmatprep.mubr.bf16.mxu0 %v1649_v13  ;;  %1615 = vmatprep.mubr.bf16.mxu1 %v1650_v14 }
  0x36   :  { %1608 = vmatmul.mubr.bf16.gmra.mrb[4].mxu0 %v1651_v15  ;;  %1616 = vmatmul.mubr.bf16.gmra.mrb[4].mxu1 %v1652_v16 }
 0x101   :  { %v1605_v21 = vpop.f32.mrb[0].mxu0  ;;  %v1613_v22 = vpop.f32.mrb[0].mxu1 }
 0x102   :  { %v322_v25 = vadd.f32 %v1605_v21, %v97_v17  ;;  %v330_v26 = vadd.f32 %v1613_v22, %v105_v18  ;;  %v257_v27 = vpop.f32.mrb[1].mxu0  ;;  %v289_v28 = vpop.f32.mrb[1].mxu1 }
 0x103   :  { %v320_v31 = vadd.f32 %v257_v27, %v95_v19  ;;  %v328_v32 = vadd.f32 %v289_v28, %v103_v20  ;;  %v1606_v33 = vpop.f32.mrb[2].mxu0  ;;  %v1614_v34 = vpop.f32.mrb[2].mxu1 }
 0x104   :  { %338 = vst [vmem:[#allocation2 + $0x10] sm:$0xff] %v322_v25  ;;  %346 = vst [vmem:[#allocation2 + $0x50] sm:$0xff] %v330_v26  ;;  %v323_v35 = vadd.f32 %v1606_v33, %v98_v23  ;;  %v331_v36 = vadd.f32 %v1614_v34, %v106_v24  ;;  %v260_v37 = vpop.f32.mrb[3].mxu0  ;;  %v292_v38 = vpop.f32.mrb[3].mxu1 }
 0x105   :  { %336 = vst [vmem:[#allocation2] sm:$0xff] %v320_v31  ;;  %344 = vst [vmem:[#allocation2 + $0x40] sm:$0xff] %v328_v32  ;;  %v321_v39 = vadd.f32 %v260_v37, %v96_v29  ;;  %v329_v40 = vadd.f32 %v292_v38, %v104_v30 }
 0x106   :  { %339 = vst [vmem:[#allocation2 + $0x18] sm:$0xff] %v323_v35  ;;  %347 = vst [vmem:[#allocation2 + $0x58] sm:$0xff] %v331_v36 }
 0x107   :  { %337 = vst [vmem:[#allocation2 + $0x8] sm:$0xff] %v321_v39  ;;  %345 = vst [vmem:[#allocation2 + $0x48] sm:$0xff] %v329_v40 }
 0x109   :  { %v1609_v45 = vpop.f32.mrb[4].mxu0  ;;  %v1617_v46 = vpop.f32.mrb[4].mxu1 }
 0x10a   :  { %v326_v49 = vadd.f32 %v1609_v45, %v101_v41  ;;  %v334_v50 = vadd.f32 %v1617_v46, %v109_v42  ;;  %v273_v51 = vpop.f32.mrb[5].mxu0  ;;  %v305_v52 = vpop.f32.mrb[5].mxu1 }
 0x10b   :  { %v324_v55 = vadd.f32 %v273_v51, %v99_v43  ;;  %v332_v56 = vadd.f32 %v305_v52, %v107_v44  ;;  %v1610_v57 = vpop.f32.mrb[6].mxu0  ;;  %v1618_v58 = vpop.f32.mrb[6].mxu1 }
 0x10c   :  { %342 = vst [vmem:[#allocation2 + $0x30] sm:$0xff] %v326_v49  ;;  %350 = vst [vmem:[#allocation2 + $0x70] sm:$0xff] %v334_v50  ;;  %v327_v59 = vadd.f32 %v1610_v57, %v102_v47  ;;  %v335_v60 = vadd.f32 %v1618_v58, %v110_v48  ;;  %v276_v61 = vpop.f32.mrb[7].mxu0  ;;  %v308_v62 = vpop.f32.mrb[7].mxu1 }
 0x10d   :  { %340 = vst [vmem:[#allocation2 + $0x20] sm:$0xff] %v324_v55  ;;  %348 = vst [vmem:[#allocation2 + $0x60] sm:$0xff] %v332_v56  ;;  %v325_v63 = vadd.f32 %v276_v61, %v100_v53  ;;  %v333_v0 = vadd.f32 %v308_v62, %v108_v54 }
 0x10e   :  { %343 = vst [vmem:[#allocation2 + $0x38] sm:$0xff] %v327_v59  ;;  %351 = vst [vmem:[#allocation2 + $0x78] sm:$0xff] %v335_v60 }
 0x10f   :  { %341 = vst [vmem:[#allocation2 + $0x28] sm:$0xff] %v325_v63  ;;  %349 = vst [vmem:[#allocation2 + $0x68] sm:$0xff] %v333_v0 }
 0x110 PF:  { %v1758_v1 = vld [vmem:[%s2574_s6 + $0x10] sm:$0xff]  ;;  %v1763_v2 = vld [vmem:[%s2574_s6] sm:$0xff]  ;;  %v1768_v3 = vld [vmem:[%s2574_s6 + $0x18] sm:$0xff]  ;;  %v2579_v4 = vmov 0  }
 0x111   :  { %1654 = vset.pattern.permute.xlu1 %v2579_v4  ;;  %1653 = vset.pattern.permute.xlu0 %v2579_v4  ;;  %vm460_vm0 = vcmp.eq.s32.totalorder %v1758_v1, 0  ;;  %vm458_vm1 = vcmp.eq.s32.totalorder %v1763_v2, 0  ;;  %vm461_vm2 = vcmp.eq.s32.totalorder %v1768_v3, 0  ;;  %v1778_v5 = vld [vmem:[%s2574_s6 + $0x8] sm:$0xff]  ;;  %v1791_v9 = vld [vmem:[%s2574_s6 + $0x20] sm:$0xff]  ;;  %v1800_v12 = vld [vmem:[%s2574_s6 + $0x38] sm:$0xff] }
 0x112   :  { %v476_v6 = vsel %vm460_vm0, 1, %v2579_v4  ;;  %v474_v7 = vsel %vm458_vm1, 1, %v2579_v4  ;;  %vm459_vm3 = vcmp.eq.s32.totalorder %v1778_v5, 0  ;;  %v1786_v8 = vld [vmem:[%s2574_s6 + $0x28] sm:$0xff]  ;;  %v477_v10 = vsel %vm461_vm2, 1, %v2579_v4  ;;  %v1805_v13 = vld [vmem:[%s2574_s6 + $0x30] sm:$0xff] }
 0x113   :  { %497 = vperm.xlu1 %1654, %v476_v6   ;;  %491 = vperm.xlu0 %1653, %v474_v7   ;;  %v475_v11 = vsel %vm459_vm3, 1, %v2579_v4  ;;  %vm463_vm4 = vcmp.eq.s32.totalorder %v1786_v8, 0  ;;  %vm462_vm5 = vcmp.eq.s32.totalorder %v1791_v9, 0  ;;  %vm465_vm6 = vcmp.eq.s32.totalorder %v1800_v12, 0  ;;  %v1814_v16 = vld [vmem:[%s2574_s6 + $0x48] sm:$0xff]  ;;  %v1819_v17 = vld [vmem:[%s2574_s6 + $0x40] sm:$0xff] }
 0x114   :  { %v479_v14 = vsel %vm463_vm4, 1, %v2579_v4  ;;  %v478_v15 = vsel %vm462_vm5, 1, %v2579_v4  ;;  %vm464_vm7 = vcmp.eq.s32.totalorder %v1805_v13, 0  ;;  %v481_v18 = vsel %vm465_vm6, 1, %v2579_v4  ;;  %v1828_v20 = vld [vmem:[%s2574_s6 + $0x58] sm:$0xff]  ;;  %v1833_v21 = vld [vmem:[%s2574_s6 + $0x50] sm:$0xff] }
 0x115   :  { %v480_v19 = vsel %vm464_vm7, 1, %v2579_v4  ;;  %vm467_vm8 = vcmp.eq.s32.totalorder %v1814_v16, 0  ;;  %vm466_vm9 = vcmp.eq.s32.totalorder %v1819_v17, 0  ;;  %vm469_vm10 = vcmp.eq.s32.totalorder %v1828_v20, 0  ;;  %v1842_v24 = vld [vmem:[%s2574_s6 + $0x68] sm:$0xff]  ;;  %v1847_v25 = vld [vmem:[%s2574_s6 + $0x60] sm:$0xff] }
 0x116   :  { %v483_v22 = vsel %vm467_vm8, 1, %v2579_v4  ;;  %v482_v23 = vsel %vm466_vm9, 1, %v2579_v4  ;;  %vm468_vm11 = vcmp.eq.s32.totalorder %v1833_v21, 0  ;;  %v485_v26 = vsel %vm469_vm10, 1, %v2579_v4  ;;  %v1856_v28 = vld [vmem:[%s2574_s6 + $0x78] sm:$0xff]  ;;  %v1861_v29 = vld [vmem:[%s2574_s6 + $0x70] sm:$0xff] }
 0x117   :  { %500 = vperm.xlu1 %1654, %v477_v10   ;;  %494 = vperm.xlu0 %1653, %v475_v11   ;;  %v484_v27 = vsel %vm468_vm11, 1, %v2579_v4  ;;  %vm471_vm12 = vcmp.eq.s32.totalorder %v1842_v24, 0  ;;  %vm470_vm13 = vcmp.eq.s32.totalorder %v1847_v25, 0  ;;  %vm473_vm14 = vcmp.eq.s32.totalorder %v1856_v28, 0 }
 0x118   :  { %v487_v30 = vsel %vm471_vm12, 1, %v2579_v4  ;;  %v486_v31 = vsel %vm470_vm13, 1, %v2579_v4  ;;  %vm472_vm15 = vcmp.eq.s32.totalorder %v1861_v29, 0  ;;  %v489_v32 = vsel %vm473_vm14, 1, %v2579_v4 }
 0x119   :  { %v488_v33 = vsel %vm472_vm15, 1, %v2579_v4  ;;  %vm592_vm0 = vcmp.eq.s32.totalorder %v1778_v5, 1  ;;  %vm591_vm1 = vcmp.eq.s32.totalorder %v1763_v2, 1  ;;  %vm594_vm2 = vcmp.eq.s32.totalorder %v1768_v3, 1 }
 0x11a   :  { %v608_v34 = vsel %vm592_vm0, 1, %v2579_v4  ;;  %v607_v35 = vsel %vm591_vm1, 1, %v2579_v4  ;;  %vm593_vm3 = vcmp.eq.s32.totalorder %v1758_v1, 1  ;;  %v610_v36 = vsel %vm594_vm2, 1, %v2579_v4 }
 0x11b   :  { %506 = vperm.xlu1 %1654, %v479_v14   ;;  %503 = vperm.xlu0 %1653, %v478_v15   ;;  %v609_v37 = vsel %vm593_vm3, 1, %v2579_v4  ;;  %vm596_vm4 = vcmp.eq.s32.totalorder %v1786_v8, 1  ;;  %vm595_vm5 = vcmp.eq.s32.totalorder %v1791_v9, 1  ;;  %vm598_vm6 = vcmp.eq.s32.totalorder %v1800_v12, 1 }
 0x11c   :  { %v612_v38 = vsel %vm596_vm4, 1, %v2579_v4  ;;  %v611_v39 = vsel %vm595_vm5, 1, %v2579_v4  ;;  %vm597_vm7 = vcmp.eq.s32.totalorder %v1805_v13, 1  ;;  %v614_v40 = vsel %vm598_vm6, 1, %v2579_v4 }
 0x11d   :  { %v613_v41 = vsel %vm597_vm7, 1, %v2579_v4  ;;  %vm600_vm8 = vcmp.eq.s32.totalorder %v1814_v16, 1  ;;  %vm599_vm9 = vcmp.eq.s32.totalorder %v1819_v17, 1  ;;  %vm602_vm10 = vcmp.eq.s32.totalorder %v1828_v20, 1 }
 0x11e   :  { %v616_v42 = vsel %vm600_vm8, 1, %v2579_v4  ;;  %v615_v43 = vsel %vm599_vm9, 1, %v2579_v4  ;;  %vm601_vm11 = vcmp.eq.s32.totalorder %v1833_v21, 1  ;;  %v618_v44 = vsel %vm602_vm10, 1, %v2579_v4 }
 0x11f   :  { %512 = vperm.xlu1 %1654, %v481_v18   ;;  %509 = vperm.xlu0 %1653, %v480_v19   ;;  %v617_v45 = vsel %vm601_vm11, 1, %v2579_v4  ;;  %vm604_vm12 = vcmp.eq.s32.totalorder %v1842_v24, 1  ;;  %vm603_vm13 = vcmp.eq.s32.totalorder %v1847_v25, 1  ;;  %vm606_vm14 = vcmp.eq.s32.totalorder %v1856_v28, 1 }
 0x120   :  { %v620_v46 = vsel %vm604_vm12, 1, %v2579_v4  ;;  %v619_v47 = vsel %vm603_vm13, 1, %v2579_v4  ;;  %vm605_vm15 = vcmp.eq.s32.totalorder %v1861_v29, 1  ;;  %v622_v48 = vsel %vm606_vm14, 1, %v2579_v4 }
 0x121   :  { %v621_v49 = vsel %vm605_vm15, 1, %v2579_v4  ;;  %vm725_vm0 = vcmp.eq.s32.totalorder %v1778_v5, 2  ;;  %vm724_vm1 = vcmp.eq.s32.totalorder %v1763_v2, 2  ;;  %vm727_vm2 = vcmp.eq.s32.totalorder %v1768_v3, 2 }
 0x122   :  { %v741_v50 = vsel %vm725_vm0, 1, %v2579_v4  ;;  %v740_v51 = vsel %vm724_vm1, 1, %v2579_v4  ;;  %vm726_vm3 = vcmp.eq.s32.totalorder %v1758_v1, 2  ;;  %v743_v52 = vsel %vm727_vm2, 1, %v2579_v4 }
 0x123   :  { %518 = vperm.xlu1 %1654, %v483_v22   ;;  %515 = vperm.xlu0 %1653, %v482_v23   ;;  %v742_v53 = vsel %vm726_vm3, 1, %v2579_v4  ;;  %vm729_vm4 = vcmp.eq.s32.totalorder %v1786_v8, 2  ;;  %vm728_vm5 = vcmp.eq.s32.totalorder %v1791_v9, 2  ;;  %vm731_vm6 = vcmp.eq.s32.totalorder %v1800_v12, 2 }
 0x124   :  { %v745_v54 = vsel %vm729_vm4, 1, %v2579_v4  ;;  %v744_v55 = vsel %vm728_vm5, 1, %v2579_v4  ;;  %vm730_vm7 = vcmp.eq.s32.totalorder %v1805_v13, 2  ;;  %v747_v56 = vsel %vm731_vm6, 1, %v2579_v4 }
 0x125   :  { %v746_v57 = vsel %vm730_vm7, 1, %v2579_v4  ;;  %vm733_vm8 = vcmp.eq.s32.totalorder %v1814_v16, 2  ;;  %vm732_vm9 = vcmp.eq.s32.totalorder %v1819_v17, 2  ;;  %vm735_vm10 = vcmp.eq.s32.totalorder %v1828_v20, 2 }
 0x126   :  { %v749_v58 = vsel %vm733_vm8, 1, %v2579_v4  ;;  %v748_v59 = vsel %vm732_vm9, 1, %v2579_v4  ;;  %vm734_vm11 = vcmp.eq.s32.totalorder %v1833_v21, 2  ;;  %v751_v60 = vsel %vm735_vm10, 1, %v2579_v4 }
 0x127   :  { %524 = vperm.xlu1 %1654, %v485_v26   ;;  %521 = vperm.xlu0 %1653, %v484_v27   ;;  %v750_v61 = vsel %vm734_vm11, 1, %v2579_v4  ;;  %vm737_vm12 = vcmp.eq.s32.totalorder %v1842_v24, 2  ;;  %vm736_vm13 = vcmp.eq.s32.totalorder %v1847_v25, 2  ;;  %vm739_vm14 = vcmp.eq.s32.totalorder %v1856_v28, 2 }
 0x128   :  { %v753_v62 = vsel %vm737_vm12, 1, %v2579_v4  ;;  %v752_v63 = vsel %vm736_vm13, 1, %v2579_v4  ;;  %vm738_vm15 = vcmp.eq.s32.totalorder %v1861_v29, 2  ;;  %v755_v0 = vsel %vm739_vm14, 1, %v2579_v4 }
 0x129   :  { %v754_v6 = vsel %vm738_vm15, 1, %v2579_v4  ;;  %vm858_vm0 = vcmp.eq.s32.totalorder %v1778_v5, 3  ;;  %vm857_vm1 = vcmp.eq.s32.totalorder %v1763_v2, 3  ;;  %vm860_vm2 = vcmp.eq.s32.totalorder %v1768_v3, 3 }
 0x12a   :  { %v874_v7 = vsel %vm858_vm0, 1, %v2579_v4  ;;  %v873_v10 = vsel %vm857_vm1, 1, %v2579_v4  ;;  %vm859_vm3 = vcmp.eq.s32.totalorder %v1758_v1, 3  ;;  %v876_v11 = vsel %vm860_vm2, 1, %v2579_v4 }
 0x12b   :  { %530 = vperm.xlu1 %1654, %v487_v30   ;;  %527 = vperm.xlu0 %1653, %v486_v31   ;;  %v875_v14 = vsel %vm859_vm3, 1, %v2579_v4  ;;  %vm862_vm4 = vcmp.eq.s32.totalorder %v1786_v8, 3  ;;  %vm861_vm5 = vcmp.eq.s32.totalorder %v1791_v9, 3  ;;  %vm864_vm6 = vcmp.eq.s32.totalorder %v1800_v12, 3 }
 0x12c   :  { %v878_v15 = vsel %vm862_vm4, 1, %v2579_v4  ;;  %v877_v18 = vsel %vm861_vm5, 1, %v2579_v4  ;;  %vm863_vm7 = vcmp.eq.s32.totalorder %v1805_v13, 3  ;;  %v880_v19 = vsel %vm864_vm6, 1, %v2579_v4 }
 0x12d   :  { %v879_v22 = vsel %vm863_vm7, 1, %v2579_v4  ;;  %vm866_vm8 = vcmp.eq.s32.totalorder %v1814_v16, 3  ;;  %vm865_vm9 = vcmp.eq.s32.totalorder %v1819_v17, 3  ;;  %vm868_vm10 = vcmp.eq.s32.totalorder %v1828_v20, 3 }
 0x12e   :  { %v882_v23 = vsel %vm866_vm8, 1, %v2579_v4  ;;  %v881_v26 = vsel %vm865_vm9, 1, %v2579_v4  ;;  %vm867_vm11 = vcmp.eq.s32.totalorder %v1833_v21, 3  ;;  %v884_v27 = vsel %vm868_vm10, 1, %v2579_v4 }
 0x12f   :  { %536 = vperm.xlu1 %1654, %v489_v32   ;;  %533 = vperm.xlu0 %1653, %v488_v33   ;;  %v883_v30 = vsel %vm867_vm11, 1, %v2579_v4  ;;  %vm870_vm12 = vcmp.eq.s32.totalorder %v1842_v24, 3  ;;  %vm869_vm13 = vcmp.eq.s32.totalorder %v1847_v25, 3  ;;  %vm872_vm14 = vcmp.eq.s32.totalorder %v1856_v28, 3 }
 0x130   :  { %v886_v31 = vsel %vm870_vm12, 1, %v2579_v4  ;;  %v885_v32 = vsel %vm869_vm13, 1, %v2579_v4  ;;  %vm871_vm15 = vcmp.eq.s32.totalorder %v1861_v29, 3  ;;  %v888_v33 = vsel %vm872_vm14, 1, %v2579_v4 }
 0x131   :  { %vm991_vm0 = vcmp.eq.s32.totalorder %v1778_v5, 4  ;;  %vm990_vm1 = vcmp.eq.s32.totalorder %v1763_v2, 4  ;;  %vm993_vm2 = vcmp.eq.s32.totalorder %v1768_v3, 4  ;;  %vm992_vm3 = vcmp.eq.s32.totalorder %v1758_v1, 4 }
 0x132   :  { %vm995_vm4 = vcmp.eq.s32.totalorder %v1786_v8, 4  ;;  %vm994_vm5 = vcmp.eq.s32.totalorder %v1791_v9, 4  ;;  %vm997_vm6 = vcmp.eq.s32.totalorder %v1800_v12, 4  ;;  %vm996_vm7 = vcmp.eq.s32.totalorder %v1805_v13, 4 }
 0x133   :  { %627 = vperm.xlu1 %1654, %v608_v34   ;;  %624 = vperm.xlu0 %1653, %v607_v35   ;;  %v887_v34 = vsel %vm871_vm15, 1, %v2579_v4  ;;  %v1007_v35 = vsel %vm991_vm0, 1, %v2579_v4  ;;  %vm999_vm8 = vcmp.eq.s32.totalorder %v1814_v16, 4  ;;  %vm998_vm9 = vcmp.eq.s32.totalorder %v1819_v17, 4 }
 0x134   :  { %vm1001_vm10 = vcmp.eq.s32.totalorder %v1828_v20, 4  ;;  %vm1000_vm11 = vcmp.eq.s32.totalorder %v1833_v21, 4  ;;  %vm1003_vm12 = vcmp.eq.s32.totalorder %v1842_v24, 4  ;;  %vm1002_vm13 = vcmp.eq.s32.totalorder %v1847_v25, 4 }
 0x135   :  { %vm1005_vm15 = vcmp.eq.s32.totalorder %v1856_v28, 4  ;;  %vm1004_vm0 = vcmp.eq.s32.totalorder %v1861_v29, 4 }
 0x137   :  { %633 = vperm.xlu1 %1654, %v610_v36   ;;  %630 = vperm.xlu0 %1653, %v609_v37   ;;  %v1006_v36 = vsel %vm990_vm1, 1, %v2579_v4 }
 0x13b   :  { %639 = vperm.xlu1 %1654, %v612_v38   ;;  %636 = vperm.xlu0 %1653, %v611_v39   ;;  %v1009_v39 = vsel %vm993_vm2, 1, %v2579_v4 }
 0x13f   :  { %645 = vperm.xlu1 %1654, %v614_v40   ;;  %642 = vperm.xlu0 %1653, %v613_v41   ;;  %v1008_v40 = vsel %vm992_vm3, 1, %v2579_v4 }
 0x143   :  { %651 = vperm.xlu1 %1654, %v616_v42   ;;  %648 = vperm.xlu0 %1653, %v615_v43   ;;  %v1011_v43 = vsel %vm995_vm4, 1, %v2579_v4  ;;  %vm1124_vm4 = vcmp.eq.s32.totalorder %v1778_v5, 5 }
 0x147   :  { %657 = vperm.xlu1 %1654, %v618_v44   ;;  %654 = vperm.xlu0 %1653, %v617_v45   ;;  %v1010_v44 = vsel %vm994_vm5, 1, %v2579_v4  ;;  %vm1123_vm5 = vcmp.eq.s32.totalorder %v1763_v2, 5 }
 0x14b   :  { %663 = vperm.xlu1 %1654, %v620_v46   ;;  %660 = vperm.xlu0 %1653, %v619_v47   ;;  %v1013_v47 = vsel %vm997_vm6, 1, %v2579_v4 }
 0x14f   :  { %669 = vperm.xlu1 %1654, %v622_v48   ;;  %666 = vperm.xlu0 %1653, %v621_v49   ;;  %v1012_v48 = vsel %vm996_vm7, 1, %v2579_v4 }
 0x153   :  { %760 = vperm.xlu1 %1654, %v741_v50   ;;  %757 = vperm.xlu0 %1653, %v740_v51   ;;  %v1015_v51 = vsel %vm999_vm8, 1, %v2579_v4  ;;  %vm1126_vm8 = vcmp.eq.s32.totalorder %v1768_v3, 5 }
 0x157   :  { %766 = vperm.xlu1 %1654, %v743_v52   ;;  %763 = vperm.xlu0 %1653, %v742_v53   ;;  %v1014_v52 = vsel %vm998_vm9, 1, %v2579_v4  ;;  %v357_v53 = vld [vmem:[#allocation2 + $0x10] sm:$0xff]  ;;  %vm1125_vm9 = vcmp.eq.s32.totalorder %v1758_v1, 5 }
 0x15b   :  { %772 = vperm.xlu1 %1654, %v745_v54   ;;  %769 = vperm.xlu0 %1653, %v744_v55   ;;  %v2004_v54 = vld [vmem:[%s2573_s5] ss:$0 sm:$0xff] }
 0x15f   :  { %778 = vperm.xlu1 %1654, %v747_v56   ;;  %775 = vperm.xlu0 %1653, %v746_v57   ;;  %v355_v57 = vld [vmem:[#allocation2] sm:$0xff] }
 0x163   :  { %784 = vperm.xlu1 %1654, %v749_v58   ;;  %781 = vperm.xlu0 %1653, %v748_v59   ;;  %v358_v58 = vld [vmem:[#allocation2 + $0x18] sm:$0xff]  ;;  %v380_v59 = vadd.f32 %v2004_v54, %v357_v53 }
 0x165   :  { %vm396_vm14 = vcmp.gt.f32.partialorder %v380_v59, 0.0 }
 0x167   :  { %790 = vperm.xlu1 %1654, %v751_v60   ;;  %787 = vperm.xlu0 %1653, %v750_v61   ;;  %v356_v60 = vld [vmem:[#allocation2 + $0x8] sm:$0xff]  ;;  %v1017_v61 = vsel %vm1001_vm10, 1, %v2579_v4 }
 0x16b   :  { %796 = vperm.xlu1 %1654, %v753_v62   ;;  %793 = vperm.xlu0 %1653, %v752_v63   ;;  %v1016_v62 = vsel %vm1000_vm11, 1, %v2579_v4  ;;  %v378_v63 = vadd.f32 %v2004_v54, %v355_v57 }
 0x16d   :  { %vm394_vm1 = vcmp.gt.f32.partialorder %v378_v63, 0.0 }
 0x16f   :  { %802 = vperm.xlu1 %1654, %v755_v0   ;;  %799 = vperm.xlu0 %1653, %v754_v6   ;;  %v381_v0 = vadd.f32 %v2004_v54, %v358_v58  ;;  %v360_v6 = vld [vmem:[#allocation2 + $0x28] sm:$0xff] }
 0x171   :  { %vm397_vm2 = vcmp.gt.f32.partialorder %v381_v0, 0.0 }
 0x173   :  { %893 = vperm.xlu1 %1654, %v874_v7   ;;  %890 = vperm.xlu0 %1653, %v873_v10  }
 0x177   :  { %899 = vperm.xlu1 %1654, %v876_v11   ;;  %896 = vperm.xlu0 %1653, %v875_v14   ;;  %v379_v11 = vadd.f32 %v2004_v54, %v356_v60  ;;  %v412_v14 = vmul.f32 0.01, %v380_v59 }
 0x179   :  { %vm395_vm3 = vcmp.gt.f32.partialorder %v379_v11, 0.0 }
 0x17b   :  { %905 = vperm.xlu1 %1654, %v878_v15   ;;  %902 = vperm.xlu0 %1653, %v877_v18   ;;  %v1019_v15 = vsel %vm1003_vm12, 1, %v2579_v4  ;;  %v1018_v18 = vsel %vm1002_vm13, 1, %v2579_v4 }
 0x17f   :  { %911 = vperm.xlu1 %1654, %v880_v19   ;;  %908 = vperm.xlu0 %1653, %v879_v22   ;;  %v383_v19 = vadd.f32 %v2004_v54, %v360_v6  ;;  %v359_v22 = vld [vmem:[#allocation2 + $0x20] sm:$0xff]  ;;  %v1139_v6 = vsel %vm1123_vm5, 1, %v2579_v4 }
 0x181   :  { %vm399_vm6 = vcmp.gt.f32.partialorder %v383_v19, 0.0 }
 0x183   :  { %917 = vperm.xlu1 %1654, %v882_v23   ;;  %914 = vperm.xlu0 %1653, %v881_v26   ;;  %v410_v23 = vmul.f32 0.01, %v378_v63  ;;  %v413_v26 = vmul.f32 0.01, %v381_v0 }
 0x187   :  { %923 = vperm.xlu1 %1654, %v884_v27   ;;  %920 = vperm.xlu0 %1653, %v883_v30   ;;  %v362_v27 = vld [vmem:[#allocation2 + $0x38] sm:$0xff] }
 0x18b   :  { %929 = vperm.xlu1 %1654, %v886_v31   ;;  %926 = vperm.xlu0 %1653, %v885_v32   ;;  %v411_v32 = vmul.f32 0.01, %v379_v11 }
 0x18d   :  { %v2058_v58 = vsel %vm395_vm3, %v379_v11, %v411_v32  ;;  %vm1130_vm3 = vcmp.eq.s32.totalorder %v1800_v12, 5 }
 0x18f   :  { %935 = vperm.xlu1 %1654, %v888_v33   ;;  %932 = vperm.xlu0 %1653, %v887_v34   ;;  %v361_v33 = vld [vmem:[#allocation2 + $0x30] sm:$0xff]  ;;  %v2034_v34 = vsel %vm396_vm14, %v380_v59, %v412_v14  ;;  %vm1128_vm14 = vcmp.eq.s32.totalorder %v1786_v8, 5 }
 0x192   :  { %v1971_v37 = vpop.permute.xlu1 %497  ;;  %v1973_v38 = vpop.permute.xlu0 %491 }
 0x193   :  { %1026 = vperm.xlu1 %1654, %v1007_v35   ;;  %1023 = vperm.xlu0 %1653, %v1006_v36   ;;  %v382_v35 = vadd.f32 %v2004_v54, %v359_v22  ;;  %v364_v36 = vld [vmem:[#allocation2 + $0x48] sm:$0xff] }
 0x194   :  { %v387_v59 = vadd.f32 %v2004_v54, %v364_v36 }
 0x195   :  { %vm398_vm7 = vcmp.gt.f32.partialorder %v382_v35, 0.0 }
 0x196   :  { %v1979_v41 = vpop.permute.xlu1 %500  ;;  %v1981_v42 = vpop.permute.xlu0 %494  ;;  %vm403_vm12 = vcmp.gt.f32.partialorder %v387_v59, 0.0 }
 0x197   :  { %1032 = vperm.xlu1 %1654, %v1009_v39   ;;  %1029 = vperm.xlu0 %1653, %v1008_v40   ;;  %v363_v39 = vld [vmem:[#allocation2 + $0x40] sm:$0xff]  ;;  %v1021_v40 = vsel %vm1005_vm15, 1, %v2579_v4  ;;  %vm1127_vm15 = vcmp.eq.s32.totalorder %v1791_v9, 5 }
 0x198   :  { %v386_v60 = vadd.f32 %v2004_v54, %v363_v39 }
 0x19a   :  { %v1987_v45 = vpop.permute.xlu1 %506  ;;  %v1989_v46 = vpop.permute.xlu0 %503  ;;  %vm402_vm13 = vcmp.gt.f32.partialorder %v386_v60, 0.0  ;;  %v418_v36 = vmul.f32 0.01, %v386_v60 }
 0x19b   :  { %1038 = vperm.xlu1 %1654, %v1011_v43   ;;  %1035 = vperm.xlu0 %1653, %v1010_v44   ;;  %v1020_v43 = vsel %vm1004_vm0, 1, %v2579_v4  ;;  %v415_v44 = vmul.f32 0.01, %v383_v19 }
 0x19d   :  { %v2068_v11 = vsel %vm399_vm6, %v383_v19, %v415_v44  ;;  %v419_v19 = vmul.f32 0.01, %v387_v59  ;;  %v1141_v44 = vsel %vm1125_vm9, 1, %v2579_v4  ;;  %vm1131_vm9 = vcmp.eq.s32.totalorder %v1819_v17, 5 }
 0x19e   :  { %v1995_v49 = vpop.permute.xlu1 %512  ;;  %v1997_v50 = vpop.permute.xlu0 %509 }
 0x19f   :  { %1044 = vperm.xlu1 %1654, %v1013_v47   ;;  %1041 = vperm.xlu0 %1653, %v1012_v48   ;;  %v385_v47 = vadd.f32 %v2004_v54, %v362_v27  ;;  %v2047_v48 = vsel %vm394_vm1, %v378_v63, %v410_v23  ;;  %v365_v63 = vld [vmem:[#allocation2 + $0x50] sm:$0xff] }
 0x1a0   :  { %v369_v27 = vld [vmem:[#allocation2 + $0x70] sm:$0xff]  ;;  %v388_v39 = vadd.f32 %v2004_v54, %v365_v63 }
 0x1a1   :  { %v417_v14 = vmul.f32 0.01, %v385_v47  ;;  %vm401_vm10 = vcmp.gt.f32.partialorder %v385_v47, 0.0 }
 0x1a2   :  { %v2008_v55 = vpop.permute.xlu1 %518  ;;  %v2010_v56 = vpop.permute.xlu0 %515  ;;  %vm404_vm1 = vcmp.gt.f32.partialorder %v388_v39, 0.0 }
 0x1a3   :  { %1050 = vperm.xlu1 %1654, %v1015_v51   ;;  %1047 = vperm.xlu0 %1653, %v1014_v52   ;;  %v2050_v51 = vsel %vm397_vm2, %v381_v0, %v413_v26  ;;  %v384_v52 = vadd.f32 %v2004_v54, %v361_v33  ;;  %v1140_v0 = vsel %vm1124_vm4, 1, %v2579_v4  ;;  %v370_v26 = vld [vmem:[#allocation2 + $0x78] sm:$0xff]  ;;  %vm1129_vm4 = vcmp.eq.s32.totalorder %v1805_v13, 5 }
 0x1a5   :  { %vm400_vm11 = vcmp.gt.f32.partialorder %v384_v52, 0.0  ;;  %v416_v22 = vmul.f32 0.01, %v384_v52 }
 0x1a6   :  { %v2019_v7 = vpop.permute.xlu1 %524  ;;  %v2021_v10 = vpop.permute.xlu0 %521 }
 0x1a7   :  { %1056 = vperm.xlu1 %1654, %v1017_v61   ;;  %1053 = vperm.xlu0 %1653, %v1016_v62   ;;  %v366_v61 = vld [vmem:[#allocation2 + $0x58] sm:$0xff]  ;;  %v414_v62 = vmul.f32 0.01, %v382_v35 }
 0x1a8   :  { %v389_v23 = vadd.f32 %v2004_v54, %v366_v61 }
 0x1a9   :  { %v2086_v61 = vsel %vm398_vm7, %v382_v35, %v414_v62  ;;  %v2101_v35 = vsel %vm400_vm11, %v384_v52, %v416_v22  ;;  %v2107_v62 = vsel %vm402_vm13, %v386_v60, %v418_v36  ;;  %vm1133_vm11 = vcmp.eq.s32.totalorder %v1833_v21, 5 }
 0x1aa   :  { %v2029_v30 = vpop.permute.xlu1 %530  ;;  %v2031_v31 = vpop.permute.xlu0 %527  ;;  %v421_v63 = vmul.f32 0.01, %v389_v23  ;;  %vm405_vm0 = vcmp.gt.f32.partialorder %v389_v23, 0.0  ;;  %vm1135_vm13 = vcmp.eq.s32.totalorder %v1847_v25, 5 }
 0x1ab   :  { %1062 = vperm.xlu1 %1654, %v1019_v15   ;;  %1059 = vperm.xlu0 %1653, %v1018_v18   ;;  %v368_v15 = vld [vmem:[#allocation2 + $0x68] sm:$0xff]  ;;  %v367_v18 = vld [vmem:[#allocation2 + $0x60] sm:$0xff] }
 0x1ae   :  { %v2053_v53 = vpop.permute.xlu1 %536  ;;  %v2055_v57 = vpop.permute.xlu0 %533 }
 0x1af   :  { %2581 = vst [vmem:[#allocation6_spill] sm:$0xff] %v2053_v53  ;;  %2582 = vst [vmem:[#allocation7_spill] sm:$0xff] %v2055_v57  ;;  %1068 = vperm.xlu1 %1654, %v1021_v40   ;;  %1065 = vperm.xlu0 %1653, %v1020_v43   ;;  %v391_v40 = vadd.f32 %v2004_v54, %v368_v15  ;;  %v1142_v43 = vsel %vm1126_vm8, 1, %v2579_v4  ;;  %v2089_v57 = vsel %vm401_vm10, %v385_v47, %v417_v14 }
 0x1b0   :  { %v392_v15 = vadd.f32 %v2004_v54, %v369_v27  ;;  %v2104_v47 = vsel %vm403_vm12, %v387_v59, %v419_v19  ;;  %v420_v14 = vmul.f32 0.01, %v388_v39  ;;  %v2117_v59 = vsel %vm405_vm0, %v389_v23, %v421_v63 }
 0x1b1   :  { %vm407_vm2 = vcmp.gt.f32.partialorder %v391_v40, 0.0  ;;  %vm1132_vm8 = vcmp.eq.s32.totalorder %v1814_v16, 5  ;;  %vm1134_vm10 = vcmp.eq.s32.totalorder %v1828_v20, 5  ;;  %vm1136_vm12 = vcmp.eq.s32.totalorder %v1842_v24, 5 }
 0x1b2   :  { %v2073_v32 = vpop.permute.xlu1 %627  ;;  %v2075_v33 = vpop.permute.xlu0 %624  ;;  %v424_v27 = vmul.f32 0.01, %v392_v15  ;;  %vm408_vm7 = vcmp.gt.f32.partialorder %v392_v15, 0.0  ;;  %vm1257_vm0 = vcmp.eq.s32.totalorder %v1778_v5, 6 }
 0x1b3   :  { %1159 = vperm.xlu1 %1654, %v1140_v0   ;;  %1156 = vperm.xlu0 %1653, %v1139_v6   ;;  %v390_v0 = vadd.f32 %v2004_v54, %v367_v18  ;;  %v393_v6 = vadd.f32 %v2004_v54, %v370_v26  ;;  %v423_v18 = vmul.f32 0.01, %v391_v40  ;;  %v2583_v26 = vmov 0  }
 0x1b4   :  { %v1144_v54 = vsel %vm1128_vm14, 1, %v2583_v26  ;;  %v1143_v52 = vsel %vm1127_vm15, 1, %v2583_v26  ;;  %v1145_v63 = vsel %vm1129_vm4, 1, %v2583_v26  ;;  %vm1138_vm14 = vcmp.eq.s32.totalorder %v1856_v28, 5 }
 0x1b5   :  { %v422_v60 = vmul.f32 0.01, %v390_v0  ;;  %v425_v22 = vmul.f32 0.01, %v393_v6  ;;  %vm406_vm5 = vcmp.gt.f32.partialorder %v390_v0, 0.0  ;;  %vm409_vm6 = vcmp.gt.f32.partialorder %v393_v6, 0.0 }
 0x1b6   :  { %v2096_v53 = vpop.permute.xlu1 %633  ;;  %v2098_v4 = vpop.permute.xlu0 %630  ;;  %v2128_v23 = vsel %vm407_vm2, %v391_v40, %v423_v18  ;;  %vm1137_vm15 = vcmp.eq.s32.totalorder %v1861_v29, 5  ;;  %v1152_v25 = vsel %vm1136_vm12, 1, %v2583_v26  ;;  %vm1259_vm2 = vcmp.eq.s32.totalorder %v1768_v3, 6 }
 0x1b7   :  { %1165 = vperm.xlu1 %1654, %v1142_v43   ;;  %1162 = vperm.xlu0 %1653, %v1141_v44   ;;  %v2125_v43 = vsel %vm404_vm1, %v388_v39, %v420_v14  ;;  %v1146_v44 = vsel %vm1130_vm3, 1, %v2583_v26  ;;  %v2140_v39 = vsel %vm406_vm5, %v390_v0, %v422_v60  ;;  %v2142_v40 = vsel %vm409_vm6, %v393_v6, %v425_v22 }
 0x1b8   :  { %v2144_v14 = vsel %vm408_vm7, %v392_v15, %v424_v27  ;;  %v1147_v0 = vsel %vm1131_vm9, 1, %v2583_v26  ;;  %v1150_v6 = vsel %vm1134_vm10, 1, %v2583_v26  ;;  %v1149_v15 = vsel %vm1133_vm11, 1, %v2583_v26 }
 0x1b9   :  { %vm1256_vm1 = vcmp.eq.s32.totalorder %v1763_v2, 6  ;;  %vm1258_vm3 = vcmp.eq.s32.totalorder %v1758_v1, 6  ;;  %vm1261_vm4 = vcmp.eq.s32.totalorder %v1786_v8, 6  ;;  %v1151_v28 = vsel %vm1135_vm13, 1, %v2583_v26 }
 0x1ba   :  { %v2119_v19 = vpop.permute.xlu1 %639  ;;  %v2121_v36 = vpop.permute.xlu0 %636  ;;  %v2173_v21 = vsel %vm1138_vm14, 1, %v2583_v26  ;;  %v2176_v24 = vsel %vm1137_vm15, 1, %v2583_v26  ;;  %v2179_v29 = vsel %vm1257_vm0, 1, %v2583_v26  ;;  %vm1260_vm5 = vcmp.eq.s32.totalorder %v1791_v9, 6 }
 0x1bb   :  { %1171 = vperm.xlu1 %1654, %v1144_v54   ;;  %1168 = vperm.xlu0 %1653, %v1143_v52   ;;  %v1148_v52 = vsel %vm1132_vm8, 1, %v2583_v26  ;;  %vm1263_vm6 = vcmp.eq.s32.totalorder %v1800_v12, 6  ;;  %vm1262_vm7 = vcmp.eq.s32.totalorder %v1805_v13, 6  ;;  %vm1265_vm8 = vcmp.eq.s32.totalorder %v1814_v16, 6 }
 0x1bc   :  { %v2188_v60 = vsel %vm1256_vm1, 1, %v2583_v26  ;;  %v2193_v22 = vsel %vm1259_vm2, 1, %v2583_v26  ;;  %v2198_v9 = vsel %vm1258_vm3, 1, %v2583_v26  ;;  %v2203_v12 = vsel %vm1261_vm4, 1, %v2583_v26 }
 0x1bd   :  { %vm540_vm9 = vcmp.eq.s32.totalorder %v1971_v37, 1  ;;  %vm538_vm10 = vcmp.eq.s32.totalorder %v1973_v38, 1  ;;  %vm543_vm11 = vcmp.eq.s32.totalorder %v1987_v45, 1  ;;  %vm542_vm12 = vcmp.eq.s32.totalorder %v1989_v46, 1 }
 0x1be   :  { %v646_v18 = vpop.permute.xlu1 %645  ;;  %v643_v54 = vpop.permute.xlu0 %642  ;;  %v2210_v13 = vsel %vm1260_vm5, 1, %v2583_v26  ;;  %v2213_v1 = vsel %vm1263_vm6, 1, %v2583_v26  ;;  %v2216_v8 = vsel %vm1262_vm7, 1, %v2583_v26  ;;  %v2219_v16 = vsel %vm1265_vm8, 1, %v2583_v26 }
 0x1bf   :  { %1177 = vperm.xlu1 %1654, %v1146_v44   ;;  %1174 = vperm.xlu0 %1653, %v1145_v63   ;;  %vm541_vm13 = vcmp.eq.s32.totalorder %v1979_v41, 1  ;;  %vm539_vm14 = vcmp.eq.s32.totalorder %v1981_v42, 1  ;;  %vm678_vm15 = vcmp.eq.s32.totalorder %v646_v18, 1  ;;  %vm677_vm0 = vcmp.eq.s32.totalorder %v643_v54, 1 }
 0x1c0   :  { %v2226_v27 = vsel %vm540_vm9, %v2034_v34, -inf  ;;  %v554_v44 = vsel %vm538_vm10, %v2047_v48, -inf  ;;  %v559_v63 = vsel %vm543_vm11, %v2068_v11, -inf  ;;  %v558_v41 = vsel %vm542_vm12, %v2086_v61, -inf }
 0x1c1   :  { %vm1264_vm1 = vcmp.eq.s32.totalorder %v1819_v17, 6  ;;  %vm674_vm2 = vcmp.eq.s32.totalorder %v2096_v53, 1  ;;  %vm673_vm3 = vcmp.eq.s32.totalorder %v2098_v4, 1  ;;  %v557_v37 = vsel %vm541_vm13, %v2050_v51, -inf }
 0x1c2   :  { %v2167_v5 = vpop.permute.xlu1 %651  ;;  %v2169_v20 = vpop.permute.xlu0 %648  ;;  %v555_v38 = vsel %vm539_vm14, %v2058_v58, -inf  ;;  %v694_v42 = vsel %vm678_vm15, %v2089_v57, -inf  ;;  %v693_v45 = vsel %vm677_vm0, %v2101_v35, -inf  ;;  %vm545_vm6 = vcmp.eq.s32.totalorder %v1995_v49, 1 }
 0x1c3   :  { %1183 = vperm.xlu1 %1654, %v1148_v52   ;;  %1180 = vperm.xlu0 %1653, %v1147_v0   ;;  %v571_v54 = vmax.f32 %v555_v38, %v559_v63  ;;  %v570_v52 = vmax.f32 %v554_v44, %v558_v41  ;;  %vm544_vm7 = vcmp.eq.s32.totalorder %v1997_v50, 1  ;;  %v690_v0 = vsel %vm674_vm2, %v2050_v51, -inf }
 0x1c4   :  { %vm547_vm8 = vcmp.eq.s32.totalorder %v2008_v55, 1  ;;  %vm546_vm9 = vcmp.eq.s32.totalorder %v2010_v56, 1  ;;  %v706_v49 = vmax.f32 %v690_v0, %v694_v42  ;;  %v560_v53 = vsel %vm544_vm7, %v2101_v35, -inf }
 0x1c5   :  { %vm549_vm10 = vcmp.eq.s32.totalorder %v2019_v7, 1  ;;  %vm548_vm11 = vcmp.eq.s32.totalorder %v2021_v10, 1  ;;  %v562_v41 = vsel %vm546_vm9, %v2107_v62, -inf  ;;  %v572_v0 = vmax.f32 %v2226_v27, %v560_v53  ;;  %v1656_v53 = vld [vmem:[%s2574_s6] sm:$0xff] }
 0x1c6   :  { %v658_v2 = vpop.permute.xlu1 %657  ;;  %v655_v3 = vpop.permute.xlu0 %654  ;;  %v564_v55 = vsel %vm548_vm11, %v2125_v43, -inf  ;;  %vm676_vm14 = vcmp.eq.s32.totalorder %v2119_v19, 1  ;;  %vm675_vm15 = vcmp.eq.s32.totalorder %v2121_v36, 1  ;;  %v2296_v7 = vsel %vm1264_vm1, 1, %v2583_v26 }
 0x1c7   :  { %1189 = vperm.xlu1 %1654, %v1150_v6   ;;  %1186 = vperm.xlu0 %1653, %v1149_v15   ;;  %vm682_vm4 = vcmp.eq.s32.totalorder %v658_v2, 1  ;;  %vm681_vm5 = vcmp.eq.s32.totalorder %v655_v3, 1  ;;  %v689_v6 = vsel %vm673_vm3, %v2034_v34, -inf  ;;  %v563_v3 = vsel %vm547_vm8, %v2104_v47, -inf }
 0x1c8   :  { %v698_v15 = vsel %vm682_vm4, %v2117_v59, -inf  ;;  %v697_v44 = vsel %vm681_vm5, %v2125_v43, -inf  ;;  %v705_v50 = vmax.f32 %v689_v6, %v693_v45  ;;  %vm672_vm0 = vcmp.eq.s32.totalorder %v2073_v32, 1  ;;  %v2584_v32 = vld [vmem:[#allocation6_spill] sm:$0xff] }
 0x1c9   :  { %v710_v2 = vmax.f32 %v706_v49, %v698_v15  ;;  %vm671_vm2 = vcmp.eq.s32.totalorder %v2075_v33, 1  ;;  %vm680_vm3 = vcmp.eq.s32.totalorder %v2167_v5, 1  ;;  %vm679_vm4 = vcmp.eq.s32.totalorder %v2169_v20, 1  ;;  %v2585_v33 = vld [vmem:[#allocation7_spill] sm:$0xff] }
 0x1ca   :  { %v2244_v18 = vpop.permute.xlu1 %663  ;;  %v2246_v46 = vpop.permute.xlu0 %660  ;;  %v709_v63 = vmax.f32 %v705_v50, %v697_v44  ;;  %v2285_v44 = vmax.f32 %v571_v54, %v563_v3  ;;  %v2304_v54 = vmax.f32 %v572_v0, %v564_v55  ;;  %v691_v17 = vsel %vm675_vm15, %v2086_v61, -inf }
 0x1cb   :  { %1195 = vperm.xlu1 %1654, %v1152_v25   ;;  %1192 = vperm.xlu0 %1653, %v1151_v28   ;;  %v561_v25 = vsel %vm545_vm6, %v2089_v57, -inf  ;;  %vm551_vm1 = vcmp.eq.s32.totalorder %v2029_v30, 1  ;;  %vm550_vm5 = vcmp.eq.s32.totalorder %v2031_v31, 1  ;;  %vm553_vm6 = vcmp.eq.s32.totalorder %v2584_v32, 1 }
 0x1cc   :  { %v573_v45 = vmax.f32 %v557_v37, %v561_v25  ;;  %v2287_v37 = vmax.f32 %v570_v52, %v562_v41  ;;  %vm552_vm7 = vcmp.eq.s32.totalorder %v2585_v33, 1  ;;  %v687_v52 = vsel %vm671_vm2, %v2047_v48, -inf  ;;  %v1655_v25 = vld [vmem:[%s2574_s6 + $0x8] sm:$0xff] }
 0x1cd   :  { %v696_v19 = vsel %vm680_vm3, %v2104_v47, -inf  ;;  %v695_v49 = vsel %vm679_vm4, %v2107_v62, -inf  ;;  %v703_v50 = vmax.f32 %v687_v52, %v691_v17  ;;  %vm684_vm8 = vcmp.eq.s32.totalorder %v2244_v18, 1 }
 0x1ce   :  { %v670_v4 = vpop.permute.xlu1 %669  ;;  %v667_v28 = vpop.permute.xlu0 %666  ;;  %vm683_vm9 = vcmp.eq.s32.totalorder %v2246_v46, 1  ;;  %vm1389_vm11 = vcmp.eq.s32.totalorder %v1656_v53, 7  ;;  %v700_v30 = vsel %vm684_vm8, %v2128_v23, -inf }
 0x1cf   :  { %vm686_vm12 = vcmp.eq.s32.totalorder %v670_v4, 1  ;;  %vm685_vm13 = vcmp.eq.s32.totalorder %v667_v28, 1  ;;  %1201 = vperm.xlu1 %1654, %v2173_v21   ;;  %1198 = vperm.xlu0 %1653, %v2176_v24   ;;  %v565_v21 = vsel %vm549_vm10, %v2117_v59, -inf  ;;  %vm1390_vm10 = vcmp.eq.s32.totalorder %v1655_v25, 7 }
 0x1d0   :  { %v702_v38 = vsel %vm686_vm12, %v2142_v40, -inf  ;;  %v701_v42 = vsel %vm685_vm13, %v2144_v14, -inf  ;;  %v2302_v10 = vmax.f32 %v573_v45, %v565_v21  ;;  %v569_v4 = vsel %vm553_vm6, %v2142_v40, -inf }
 0x1d1   :  { %v714_v6 = vmax.f32 %v710_v2, %v702_v38  ;;  %v713_v15 = vmax.f32 %v709_v63, %v701_v42  ;;  %v568_v28 = vsel %vm552_vm7, %v2144_v14, -inf  ;;  %v707_v63 = vmax.f32 %v703_v50, %v695_v49 }
 0x1d2   :  { %v761_v56 = vpop.permute.xlu1 %760  ;;  %v758_v24 = vpop.permute.xlu0 %757  ;;  %v699_v31 = vsel %vm683_vm9, %v2140_v39, -inf }
 0x1d3   :  { %v2289_v27 = vmax.f32 %v713_v15, %v714_v6  ;;  %1292 = vperm.xlu1 %1654, %v2179_v29   ;;  %1289 = vperm.xlu0 %1653, %v2188_v60   ;;  %v692_v29 = vsel %vm676_vm14, %v2068_v11, -inf  ;;  %v688_v60 = vsel %vm672_vm0, %v2058_v58, -inf  ;;  %vm805_vm12 = vcmp.eq.s32.totalorder %v761_v56, 1 }
 0x1d4   :  { %v704_v36 = vmax.f32 %v688_v60, %v692_v29  ;;  %vm804_vm13 = vcmp.eq.s32.totalorder %v758_v24, 1  ;;  %v821_v38 = vsel %vm805_vm12, %v2058_v58, -inf  ;;  %v711_v24 = vmax.f32 %v707_v63, %v699_v31 }
 0x1d5   :  { %v820_v42 = vsel %vm804_vm13, %v2047_v48, -inf }
 0x1d6   :  { %v767_v5 = vpop.permute.xlu1 %766  ;;  %v764_v20 = vpop.permute.xlu0 %763  ;;  %v708_v2 = vmax.f32 %v704_v36, %v696_v19 }
 0x1d7   :  { %1298 = vperm.xlu1 %1654, %v2193_v22   ;;  %1295 = vperm.xlu0 %1653, %v2198_v9   ;;  %v567_v22 = vsel %vm551_vm1, %v2128_v23, -inf  ;;  %v566_v9 = vsel %vm550_vm5, %v2140_v39, -inf  ;;  %vm807_vm0 = vcmp.eq.s32.totalorder %v767_v5, 1  ;;  %vm806_vm2 = vcmp.eq.s32.totalorder %v764_v20, 1 }
 0x1d8   :  { %v579_v46 = vmax.f32 %v2285_v44, %v567_v22  ;;  %v578_v15 = vmax.f32 %v2287_v37, %v566_v9  ;;  %v712_v56 = vmax.f32 %v708_v2, %v700_v30  ;;  %v823_v29 = vsel %vm807_vm0, %v2050_v51, -inf }
 0x1d9   :  { %v822_v44 = vsel %vm806_vm2, %v2034_v34, -inf }
 0x1da   :  { %v773_v3 = vpop.permute.xlu1 %772  ;;  %v770_v41 = vpop.permute.xlu0 %769  ;;  %v582_v5 = vmax.f32 %v578_v15, %v579_v46  ;;  %v715_v20 = vmax.f32 %v711_v24, %v712_v56 }
 0x1db   :  { %vm809_vm14 = vcmp.eq.s32.totalorder %v773_v3, 1  ;;  %vm808_vm15 = vcmp.eq.s32.totalorder %v770_v41, 1  ;;  %1304 = vperm.xlu1 %1654, %v2203_v12   ;;  %1301 = vperm.xlu0 %1653, %v2210_v13   ;;  %v581_v12 = vmax.f32 %v2302_v10, %v569_v4  ;;  %v580_v13 = vmax.f32 %v2304_v54, %v568_v28  ;;  %v1660_v41 = vld [vmem:[%s2574_s6 + $0x20] sm:$0xff] }
 0x1dc   :  { %v825_v45 = vsel %vm809_vm14, %v2068_v11, -inf  ;;  %v824_v0 = vsel %vm808_vm15, %v2086_v61, -inf  ;;  %v717_v25 = vmax.f32 %v715_v20, %v2289_v27  ;;  %v1659_v27 = vld [vmem:[%s2574_s6 + $0x28] sm:$0xff] }
 0x1dd   :  { %v837_v18 = vmax.f32 %v821_v38, %v825_v45  ;;  %v836_v6 = vmax.f32 %v820_v42, %v824_v0  ;;  %v583_v32 = vmax.f32 %v580_v13, %v581_v12  ;;  %v1661_v12 = vld [vmem:[%s2574_s6 + $0x38] sm:$0xff]  ;;  %v1662_v13 = vld [vmem:[%s2574_s6 + $0x30] sm:$0xff] }
 0x1de   :  { %v779_v21 = vpop.permute.xlu1 %778  ;;  %v776_v55 = vpop.permute.xlu0 %775  ;;  %v718_v31 = vrot.slane %v717_v25, 4  ;;  %vm1396_vm14 = vcmp.eq.s32.totalorder %v1661_v12, 7  ;;  %vm1395_vm15 = vcmp.eq.s32.totalorder %v1662_v13, 7 }
 0x1df   :  { %vm811_vm3 = vcmp.eq.s32.totalorder %v779_v21, 1  ;;  %vm810_vm4 = vcmp.eq.s32.totalorder %v776_v55, 1  ;;  %1310 = vperm.xlu1 %1654, %v2213_v1   ;;  %1307 = vperm.xlu0 %1653, %v2216_v8   ;;  %v1406_v1 = vsel %vm1390_vm10, 1, %v2583_v26  ;;  %v1405_v8 = vsel %vm1389_vm11, 1, %v2583_v26 }
 0x1e0   :  { %v827_v37 = vsel %vm811_vm3, %v2089_v57, -inf  ;;  %v826_v10 = vsel %vm810_vm4, %v2101_v35, -inf  ;;  %v584_v50 = vmax.f32 %v582_v5, %v583_v32  ;;  %vm1394_vm10 = vcmp.eq.s32.totalorder %v1659_v27, 7 }
 0x1e1   :  { %v839_v54 = vmax.f32 %v823_v29, %v827_v37  ;;  %v838_v17 = vmax.f32 %v822_v44, %v826_v10  ;;  %vm1393_vm11 = vcmp.eq.s32.totalorder %v1660_v41, 7  ;;  %v719_v55 = vmax.f32 %v717_v25, %v718_v31 }
 0x1e2   :  { %v785_v33 = vpop.permute.xlu1 %784  ;;  %v782_v60 = vpop.permute.xlu0 %781  ;;  %v585_v30 = vrot.slane %v584_v50, 4  ;;  %v1412_v10 = vsel %vm1396_vm14, 1, %v2583_v26 }
 0x1e3   :  { %vm813_vm1 = vcmp.eq.s32.totalorder %v785_v33, 1  ;;  %vm812_vm5 = vcmp.eq.s32.totalorder %v782_v60, 1  ;;  %1316 = vperm.xlu1 %1654, %v2219_v16   ;;  %1313 = vperm.xlu0 %1653, %v2296_v7   ;;  %v1657_v16 = vld [vmem:[%s2574_s6 + $0x18] sm:$0xff]  ;;  %v1658_v7 = vld [vmem:[%s2574_s6 + $0x10] sm:$0xff] }
 0x1e4   :  { %v829_v52 = vsel %vm813_vm1, %v2104_v47, -inf  ;;  %v828_v19 = vsel %vm812_vm5, %v2107_v62, -inf  ;;  %vm1392_vm6 = vcmp.eq.s32.totalorder %v1657_v16, 7  ;;  %vm1391_vm7 = vcmp.eq.s32.totalorder %v1658_v7, 7  ;;  %v1663_v33 = vld [vmem:[%s2574_s6 + $0x58] sm:$0xff]  ;;  %v1664_v60 = vld [vmem:[%s2574_s6 + $0x50] sm:$0xff] }
 0x1e5   :  { %v841_v49 = vmax.f32 %v837_v18, %v829_v52  ;;  %v840_v36 = vmax.f32 %v836_v6, %v828_v19  ;;  %v1408_v28 = vsel %vm1392_vm6, 1, %v2583_v26  ;;  %v1407_v2 = vsel %vm1391_vm7, 1, %v2583_v26  ;;  %v1665_v16 = vld [vmem:[%s2574_s6 + $0x48] sm:$0xff]  ;;  %v1666_v7 = vld [vmem:[%s2574_s6 + $0x40] sm:$0xff] }
 0x1e6   :  { %v791_v53 = vpop.permute.xlu1 %790  ;;  %v788_v22 = vpop.permute.xlu0 %787  ;;  %v1410_v18 = vsel %vm1394_vm10, 1, %v2583_v26  ;;  %v1409_v6 = vsel %vm1393_vm11, 1, %v2583_v26  ;;  %v586_v21 = vmax.f32 %v584_v50, %v585_v30  ;;  %vm1267_vm3 = vcmp.eq.s32.totalorder %v1663_v33, 6 }
 0x1e7   :  { %vm815_vm8 = vcmp.eq.s32.totalorder %v791_v53, 1  ;;  %vm814_vm9 = vcmp.eq.s32.totalorder %v788_v22, 1  ;;  %1425 = vperm.xlu1 %1654, %v1406_v1   ;;  %1422 = vperm.xlu0 %1653, %v1405_v8   ;;  %vm1266_vm4 = vcmp.eq.s32.totalorder %v1664_v60, 6  ;;  %v720_v8 = vrot.slane %v719_v55, 2 }
 0x1e8   :  { %v831_v9 = vsel %vm815_vm8, %v2117_v59, -inf  ;;  %v830_v4 = vsel %vm814_vm9, %v2125_v43, -inf  ;;  %v587_v1 = vrot.slane %v586_v21, 2  ;;  %v1283_v19 = vsel %vm1267_vm3, 1, %v2583_v26 }
 0x1e9   :  { %v843_v63 = vmax.f32 %v839_v54, %v831_v9  ;;  %v842_v3 = vmax.f32 %v838_v17, %v830_v4  ;;  %v1411_v54 = vsel %vm1395_vm15, 1, %v2583_v26  ;;  %vm1398_vm1 = vcmp.eq.s32.totalorder %v1665_v16, 7 }
 0x1ea   :  { %v797_v38 = vpop.permute.xlu1 %796  ;;  %v794_v42 = vpop.permute.xlu0 %793  ;;  %vm1397_vm5 = vcmp.eq.s32.totalorder %v1666_v7, 7  ;;  %v588_v50 = vmax.f32 %v586_v21, %v587_v1  ;;  %v721_v25 = vmax.f32 %v719_v55, %v720_v8  ;;  %vm1400_vm6 = vcmp.eq.s32.totalorder %v1663_v33, 7 }
 0x1eb   :  { %vm817_vm12 = vcmp.eq.s32.totalorder %v797_v38, 1  ;;  %vm816_vm13 = vcmp.eq.s32.totalorder %v794_v42, 1  ;;  %1431 = vperm.xlu1 %1654, %v1408_v28   ;;  %1428 = vperm.xlu0 %1653, %v1407_v2   ;;  %vm1399_vm7 = vcmp.eq.s32.totalorder %v1664_v60, 7  ;;  %vm1522_vm8 = vcmask 1040384   ;;  %v2426_v38 = vld [vmem:[%s2574_s6 + $0x68] sm:$0xff]  ;;  %v2432_v42 = vld [vmem:[%s2574_s6 + $0x60] sm:$0xff] }
 0x1ec   :  { %v833_v45 = vsel %vm817_vm12, %v2128_v23, -inf  ;;  %v832_v0 = vsel %vm816_vm13, %v2140_v39, -inf  ;;  %vm1524_vm9 = vcmask 1041408   ;;  %v1414_v4 = vsel %vm1398_vm1, 1, %v2583_v26 }
 0x1ed   :  { %v845_v46 = vmax.f32 %v841_v49, %v833_v45  ;;  %v844_v15 = vmax.f32 %v840_v36, %v832_v0  ;;  %v1282_v49 = vsel %vm1266_vm4, 1, %v2583_v26  ;;  %v1413_v28 = vsel %vm1397_vm5, 1, %v2583_v26 }
 0x1ee   :  { %v803_v56 = vpop.permute.xlu1 %802  ;;  %v800_v24 = vpop.permute.xlu0 %799  ;;  %v589_v27 = vrot.slane %v588_v50, 1  ;;  %v722_v41 = vrot.slane %v721_v25, 1  ;;  %vm1269_vm12 = vcmp.eq.s32.totalorder %v2426_v38, 6  ;;  %vm1268_vm13 = vcmp.eq.s32.totalorder %v2432_v42, 6 }
 0x1ef   :  { %v848_v29 = vmax.f32 %v844_v15, %v845_v46  ;;  %vm819_vm0 = vcmp.eq.s32.totalorder %v803_v56, 1  ;;  %vm818_vm2 = vcmp.eq.s32.totalorder %v800_v24, 1  ;;  %1437 = vperm.xlu1 %1654, %v1410_v18   ;;  %1434 = vperm.xlu0 %1653, %v1409_v6   ;;  %v1285_v24 = vsel %vm1269_vm12, 1, %v2583_v26 }
 0x1f0   :  { %v835_v44 = vsel %vm819_vm0, %v2142_v40, -inf  ;;  %v834_v37 = vsel %vm818_vm2, %v2144_v14, -inf  ;;  %v723_v21 = vmax.f32 %v721_v25, %v722_v41 }
 0x1f1   :  { %v847_v17 = vmax.f32 %v843_v63, %v835_v44  ;;  %v846_v32 = vmax.f32 %v842_v3, %v834_v37  ;;  %v1416_v63 = vsel %vm1400_vm6, 1, %v2583_v26  ;;  %v1415_v3 = vsel %vm1399_vm7, 1, %v2583_v26  ;;  %v1669_v44 = vld [vmem:[%s2574_s6 + $0x78] sm:$0xff] }
 0x1f2   :  { %v894_v5 = vpop.permute.xlu1 %893  ;;  %v891_v20 = vpop.permute.xlu0 %890  ;;  %vm1271_vm3 = vcmp.eq.s32.totalorder %v1669_v44, 6  ;;  %v590_v37 = vmax.f32 %v588_v50, %v589_v27  ;;  %vm1404_vm12 = vcmp.eq.s32.totalorder %v1669_v44, 7 }
 0x1f3   :  { %v849_v52 = vmax.f32 %v846_v32, %v847_v17  ;;  %1443 = vperm.xlu1 %1654, %v1412_v10   ;;  %1440 = vperm.xlu0 %1653, %v1411_v54   ;;  %vm938_vm10 = vcmp.eq.s32.totalorder %v894_v5, 1  ;;  %vm937_vm11 = vcmp.eq.s32.totalorder %v891_v20, 1  ;;  %v1670_v5 = vld [vmem:[%s2574_s6 + $0x70] sm:$0xff]  ;;  %v1287_v7 = vsel %vm1271_vm3, 1, %v2583_v26 }
 0x1f4   :  { %v954_v0 = vsel %vm938_vm10, %v2058_v58, -inf  ;;  %v953_v18 = vsel %vm937_vm11, %v2047_v48, -inf  ;;  %vm1270_vm5 = vcmp.eq.s32.totalorder %v1670_v5, 6  ;;  %v1523_v20 = vsel %vm1522_vm8, %v590_v37, %v723_v21 }
 0x1f5   :  { %v850_v36 = vmax.f32 %v848_v29, %v849_v52  ;;  %v1284_v29 = vsel %vm1268_vm13, 1, %v2583_v26  ;;  %v1286_v50 = vsel %vm1270_vm5, 1, %v2583_v26  ;;  %vm1402_vm8 = vcmp.eq.s32.totalorder %v2426_v38, 7 }
 0x1f6   :  { %v900_v53 = vpop.permute.xlu1 %899  ;;  %v897_v22 = vpop.permute.xlu0 %896  ;;  %vm1403_vm13 = vcmp.eq.s32.totalorder %v1670_v5, 7 }
 0x1f7   :  { %v851_v9 = vrot.slane %v850_v36, 4  ;;  %1322 = vperm.xlu1 %1654, %v1283_v19   ;;  %1319 = vperm.xlu0 %1653, %v1282_v49   ;;  %vm940_vm0 = vcmp.eq.s32.totalorder %v900_v53, 1  ;;  %vm939_vm2 = vcmp.eq.s32.totalorder %v897_v22, 1 }
 0x1f8   :  { %v956_v54 = vsel %vm940_vm0, %v2050_v51, -inf  ;;  %v955_v17 = vsel %vm939_vm2, %v2034_v34, -inf }
 0x1f9   :  { %v852_v2 = vmax.f32 %v850_v36, %v851_v9 }
 0x1fa   :  { %v906_v30 = vpop.permute.xlu1 %905  ;;  %v903_v31 = vpop.permute.xlu0 %902 }
 0x1fb   :  { %v853_v45 = vrot.slane %v852_v2, 2  ;;  %vm942_vm14 = vcmp.eq.s32.totalorder %v906_v30, 1  ;;  %vm941_vm15 = vcmp.eq.s32.totalorder %v903_v31, 1  ;;  %1449 = vperm.xlu1 %1654, %v1414_v4   ;;  %1446 = vperm.xlu0 %1653, %v1413_v28  }
 0x1fc   :  { %v958_v6 = vsel %vm942_vm14, %v2068_v11, -inf  ;;  %v957_v46 = vsel %vm941_vm15, %v2086_v61, -inf }
 0x1fd   :  { %v854_v15 = vmax.f32 %v852_v2, %v853_v45  ;;  %v970_v12 = vmax.f32 %v954_v0, %v958_v6  ;;  %v969_v13 = vmax.f32 %v953_v18, %v957_v46  ;;  %v1418_v2 = vsel %vm1402_vm8, 1, %v2583_v26 }
 0x1fe   :  { %v912_v55 = vpop.permute.xlu1 %911  ;;  %v909_v56 = vpop.permute.xlu0 %908  ;;  %v1419_v45 = vsel %vm1403_vm13, 1, %v2583_v26  ;;  %vm1526_vm8 = vcmask 1042432  }
 0x1ff   :  { %v855_v10 = vrot.slane %v854_v15, 1  ;;  %vm944_vm4 = vcmp.eq.s32.totalorder %v912_v55, 1  ;;  %vm943_vm1 = vcmp.eq.s32.totalorder %v909_v56, 1  ;;  %1455 = vperm.xlu1 %1654, %v1416_v63   ;;  %1452 = vperm.xlu0 %1653, %v1415_v3  }
 0x200   :  { %v960_v32 = vsel %vm944_vm4, %v2089_v57, -inf  ;;  %v959_v33 = vsel %vm943_vm1, %v2101_v35, -inf }
 0x201   :  { %v856_v60 = vmax.f32 %v854_v15, %v855_v10  ;;  %v972_v1 = vmax.f32 %v956_v54, %v960_v32  ;;  %v971_v8 = vmax.f32 %v955_v17, %v959_v33 }
 0x202   :  { %v918_v52 = vpop.permute.xlu1 %917  ;;  %v915_v19 = vpop.permute.xlu0 %914 }
 0x203   :  { %v2461_v49 = vsel %vm1524_vm9, %v1523_v20, %v856_v60  ;;  %vm946_vm6 = vcmp.eq.s32.totalorder %v918_v52, 1  ;;  %vm945_vm7 = vcmp.eq.s32.totalorder %v915_v19, 1  ;;  %1328 = vperm.xlu1 %1654, %v1285_v24   ;;  %1325 = vperm.xlu0 %1653, %v1284_v29   ;;  %vm1401_vm9 = vcmp.eq.s32.totalorder %v2432_v42, 7 }
 0x204   :  { %v962_v36 = vsel %vm946_vm6, %v2104_v47, -inf  ;;  %v961_v16 = vsel %vm945_vm7, %v2107_v62, -inf  ;;  %v1417_v63 = vsel %vm1401_vm9, 1, %v2583_v26  ;;  %v1420_v42 = vsel %vm1404_vm12, 1, %v2583_v26 }
 0x205   :  { %v974_v25 = vmax.f32 %v970_v12, %v962_v36  ;;  %v973_v53 = vmax.f32 %v969_v13, %v961_v16 }
 0x206   :  { %v924_v22 = vpop.permute.xlu1 %923  ;;  %v921_v9 = vpop.permute.xlu0 %920 }
 0x207   :  { %vm948_vm10 = vcmp.eq.s32.totalorder %v924_v22, 1  ;;  %vm947_vm11 = vcmp.eq.s32.totalorder %v921_v9, 1  ;;  %1334 = vperm.xlu1 %1654, %v1287_v7   ;;  %1331 = vperm.xlu0 %1653, %v1286_v50  }
 0x208   :  { %v964_v4 = vsel %vm948_vm10, %v2117_v59, -inf  ;;  %v963_v28 = vsel %vm947_vm11, %v2125_v43, -inf }
 0x209   :  { %v976_v3 = vmax.f32 %v972_v1, %v964_v4  ;;  %v975_v27 = vmax.f32 %v971_v8, %v963_v28 }
 0x20a   :  { %v930_v41 = vpop.permute.xlu1 %929  ;;  %v927_v30 = vpop.permute.xlu0 %926 }
 0x20b   :  { %vm950_vm14 = vcmp.eq.s32.totalorder %v930_v41, 1  ;;  %vm949_vm15 = vcmp.eq.s32.totalorder %v927_v30, 1  ;;  %1461 = vperm.xlu1 %1654, %v1418_v2   ;;  %1458 = vperm.xlu0 %1653, %v1417_v63  }
 0x20c   :  { %v966_v31 = vsel %vm950_vm14, %v2128_v23, -inf  ;;  %v965_v38 = vsel %vm949_vm15, %v2140_v39, -inf }
 0x20d   :  { %v978_v0 = vmax.f32 %v974_v25, %v966_v31  ;;  %v977_v18 = vmax.f32 %v973_v53, %v965_v38 }
 0x20e   :  { %v936_v6 = vpop.permute.xlu1 %935  ;;  %v933_v46 = vpop.permute.xlu0 %932 }
 0x20f   :  { %v981_v15 = vmax.f32 %v977_v18, %v978_v0  ;;  %vm952_vm0 = vcmp.eq.s32.totalorder %v936_v6, 1  ;;  %vm951_vm2 = vcmp.eq.s32.totalorder %v933_v46, 1  ;;  %1467 = vperm.xlu1 %1654, %v1420_v42   ;;  %1464 = vperm.xlu0 %1653, %v1419_v45  }
 0x210   :  { %v968_v12 = vsel %vm952_vm0, %v2142_v40, -inf  ;;  %v967_v13 = vsel %vm951_vm2, %v2144_v14, -inf }
 0x211   :  { %v980_v21 = vmax.f32 %v976_v3, %v968_v12  ;;  %v979_v55 = vmax.f32 %v975_v27, %v967_v13 }
 0x212   :  { %v1027_v56 = vpop.permute.xlu1 %1026  ;;  %v1024_v24 = vpop.permute.xlu0 %1023 }
 0x213   :  { %v982_v29 = vmax.f32 %v979_v55, %v980_v21  ;;  %vm1071_vm3 = vcmp.eq.s32.totalorder %v1027_v56, 1  ;;  %vm1070_vm4 = vcmp.eq.s32.totalorder %v1024_v24, 1 }
 0x214   :  { %v1087_v60 = vsel %vm1071_vm3, %v2058_v58, -inf  ;;  %v1086_v1 = vsel %vm1070_vm4, %v2047_v48, -inf }
 0x215   :  { %v983_v44 = vmax.f32 %v981_v15, %v982_v29 }
 0x216   :  { %v1033_v26 = vpop.permute.xlu1 %1032  ;;  %v1030_v37 = vpop.permute.xlu0 %1029 }
 0x217   :  { %v984_v10 = vrot.slane %v983_v44, 4  ;;  %vm1073_vm6 = vcmp.eq.s32.totalorder %v1033_v26, 1  ;;  %vm1072_vm7 = vcmp.eq.s32.totalorder %v1030_v37, 1 }
 0x218   :  { %v1089_v50 = vsel %vm1073_vm6, %v2050_v51, -inf  ;;  %v1088_v25 = vsel %vm1072_vm7, %v2034_v34, -inf }
 0x219   :  { %v985_v54 = vmax.f32 %v983_v44, %v984_v10 }
 0x21a   :  { %v1039_v17 = vpop.permute.xlu1 %1038  ;;  %v1036_v32 = vpop.permute.xlu0 %1035 }
 0x21b   :  { %v986_v33 = vrot.slane %v985_v54, 2  ;;  %vm1075_vm1 = vcmp.eq.s32.totalorder %v1039_v17, 1  ;;  %vm1074_vm5 = vcmp.eq.s32.totalorder %v1036_v32, 1 }
 0x21c   :  { %v1091_v8 = vsel %vm1075_vm1, %v2068_v11, -inf  ;;  %v1090_v5 = vsel %vm1074_vm5, %v2086_v61, -inf }
 0x21d   :  { %v987_v20 = vmax.f32 %v985_v54, %v986_v33  ;;  %v1103_v52 = vmax.f32 %v1087_v60, %v1091_v8  ;;  %v1102_v19 = vmax.f32 %v1086_v1, %v1090_v5 }
 0x21e   :  { %v1045_v36 = vpop.permute.xlu1 %1044  ;;  %v1042_v16 = vpop.permute.xlu0 %1041 }
 0x21f   :  { %v988_v7 = vrot.slane %v987_v20, 1  ;;  %vm1077_vm9 = vcmp.eq.s32.totalorder %v1045_v36, 1  ;;  %vm1076_vm10 = vcmp.eq.s32.totalorder %v1042_v16, 1 }
 0x220   :  { %v1093_v53 = vsel %vm1077_vm9, %v2089_v57, -inf  ;;  %v1092_v22 = vsel %vm1076_vm10, %v2101_v35, -inf  ;;  %vm1528_vm9 = vcmask 1043456  }
 0x221   :  { %v989_v9 = vmax.f32 %v987_v20, %v988_v7  ;;  %v1105_v4 = vmax.f32 %v1089_v50, %v1093_v53  ;;  %v1104_v28 = vmax.f32 %v1088_v25, %v1092_v22 }
 0x222   :  { %v1051_v2 = vpop.permute.xlu1 %1050  ;;  %v1048_v63 = vpop.permute.xlu0 %1047 }
 0x223   :  { %v2489_v3 = vsel %vm1526_vm8, %v2461_v49, %v989_v9  ;;  %vm1079_vm11 = vcmp.eq.s32.totalorder %v1051_v2, 1  ;;  %vm1078_vm12 = vcmp.eq.s32.totalorder %v1048_v63, 1 }
 0x224   :  { %v1095_v27 = vsel %vm1079_vm11, %v2104_v47, -inf  ;;  %v1094_v41 = vsel %vm1078_vm12, %v2107_v62, -inf }
 0x225   :  { %v1107_v30 = vmax.f32 %v1103_v52, %v1095_v27  ;;  %v1106_v31 = vmax.f32 %v1102_v19, %v1094_v41 }
 0x226   :  { %v1057_v38 = vpop.permute.xlu1 %1056  ;;  %v1054_v42 = vpop.permute.xlu0 %1053 }
 0x227   :  { %vm1081_vm13 = vcmp.eq.s32.totalorder %v1057_v38, 1  ;;  %vm1080_vm14 = vcmp.eq.s32.totalorder %v1054_v42, 1 }
 0x228   :  { %v1097_v45 = vsel %vm1081_vm13, %v2117_v59, -inf  ;;  %v1096_v0 = vsel %vm1080_vm14, %v2125_v43, -inf }
 0x229   :  { %v1109_v18 = vmax.f32 %v1105_v4, %v1097_v45  ;;  %v1108_v6 = vmax.f32 %v1104_v28, %v1096_v0 }
 0x22a   :  { %v1063_v49 = vpop.permute.xlu1 %1062  ;;  %v1060_v46 = vpop.permute.xlu0 %1059 }
 0x22b   :  { %vm1083_vm15 = vcmp.eq.s32.totalorder %v1063_v49, 1  ;;  %vm1082_vm0 = vcmp.eq.s32.totalorder %v1060_v46, 1 }
 0x22c   :  { %v1099_v15 = vsel %vm1083_vm15, %v2128_v23, -inf  ;;  %v1098_v12 = vsel %vm1082_vm0, %v2140_v39, -inf }
 0x22d   :  { %v1111_v13 = vmax.f32 %v1107_v30, %v1099_v15  ;;  %v1110_v21 = vmax.f32 %v1106_v31, %v1098_v12 }
 0x22e   :  { %v1069_v55 = vpop.permute.xlu1 %1068  ;;  %v1066_v56 = vpop.permute.xlu0 %1065 }
 0x22f   :  { %v1114_v24 = vmax.f32 %v1110_v21, %v1111_v13  ;;  %vm1085_vm2 = vcmp.eq.s32.totalorder %v1069_v55, 1  ;;  %vm1084_vm3 = vcmp.eq.s32.totalorder %v1066_v56, 1 }
 0x230   :  { %v1101_v29 = vsel %vm1085_vm2, %v2142_v40, -inf  ;;  %v1100_v44 = vsel %vm1084_vm3, %v2144_v14, -inf }
 0x231   :  { %v1113_v26 = vmax.f32 %v1109_v18, %v1101_v29  ;;  %v1112_v37 = vmax.f32 %v1108_v6, %v1100_v44 }
 0x232   :  { %v1160_v10 = vpop.permute.xlu1 %1159  ;;  %v1157_v54 = vpop.permute.xlu0 %1156 }
 0x233   :  { %v1115_v17 = vmax.f32 %v1112_v37, %v1113_v26  ;;  %vm1204_vm4 = vcmp.eq.s32.totalorder %v1160_v10, 1  ;;  %vm1203_vm1 = vcmp.eq.s32.totalorder %v1157_v54, 1 }
 0x234   :  { %v1220_v19 = vsel %vm1204_vm4, %v2058_v58, -inf  ;;  %v1219_v36 = vsel %vm1203_vm1, %v2047_v48, -inf  ;;  %vm1530_vm1 = vcmask 1044480  }
 0x235   :  { %v1116_v32 = vmax.f32 %v1114_v24, %v1115_v17 }
 0x236   :  { %v1166_v33 = vpop.permute.xlu1 %1165  ;;  %v1163_v60 = vpop.permute.xlu0 %1162 }
 0x237   :  { %v1117_v1 = vrot.slane %v1116_v32, 4  ;;  %vm1206_vm7 = vcmp.eq.s32.totalorder %v1166_v33, 1  ;;  %vm1205_vm8 = vcmp.eq.s32.totalorder %v1163_v60, 1 }
 0x238   :  { %v1222_v28 = vsel %vm1206_vm7, %v2050_v51, -inf  ;;  %v1221_v2 = vsel %vm1205_vm8, %v2034_v34, -inf }
 0x239   :  { %v1118_v8 = vmax.f32 %v1116_v32, %v1117_v1 }
 0x23a   :  { %v1172_v5 = vpop.permute.xlu1 %1171  ;;  %v1169_v20 = vpop.permute.xlu0 %1168 }
 0x23b   :  { %v1119_v52 = vrot.slane %v1118_v8, 2  ;;  %vm1208_vm5 = vcmp.eq.s32.totalorder %v1172_v5, 1  ;;  %vm1207_vm6 = vcmp.eq.s32.totalorder %v1169_v20, 1 }
 0x23c   :  { %v1224_v16 = vsel %vm1208_vm5, %v2068_v11, -inf  ;;  %v1223_v7 = vsel %vm1207_vm6, %v2086_v61, -inf }
 0x23d   :  { %v1120_v50 = vmax.f32 %v1118_v8, %v1119_v52  ;;  %v1236_v25 = vmax.f32 %v1220_v19, %v1224_v16  ;;  %v1235_v53 = vmax.f32 %v1219_v36, %v1223_v7 }
 0x23e   :  { %v1178_v22 = vpop.permute.xlu1 %1177  ;;  %v1175_v9 = vpop.permute.xlu0 %1174 }
 0x23f   :  { %v1121_v4 = vrot.slane %v1120_v50, 1  ;;  %vm1210_vm10 = vcmp.eq.s32.totalorder %v1178_v22, 1  ;;  %vm1209_vm11 = vcmp.eq.s32.totalorder %v1175_v9, 1 }
 0x240   :  { %v1226_v63 = vsel %vm1210_vm10, %v2089_v57, -inf  ;;  %v1225_v27 = vsel %vm1209_vm11, %v2101_v35, -inf }
 0x241   :  { %v1122_v41 = vmax.f32 %v1120_v50, %v1121_v4  ;;  %v1238_v30 = vmax.f32 %v1222_v28, %v1226_v63  ;;  %v1237_v31 = vmax.f32 %v1221_v2, %v1225_v27 }
 0x242   :  { %v1184_v38 = vpop.permute.xlu1 %1183  ;;  %v1181_v42 = vpop.permute.xlu0 %1180 }
 0x243   :  { %v1529_v45 = vsel %vm1528_vm9, %v2489_v3, %v1122_v41  ;;  %vm1212_vm12 = vcmp.eq.s32.totalorder %v1184_v38, 1  ;;  %vm1211_vm13 = vcmp.eq.s32.totalorder %v1181_v42, 1 }
 0x244   :  { %v1228_v0 = vsel %vm1212_vm12, %v2104_v47, -inf  ;;  %v1227_v18 = vsel %vm1211_vm13, %v2107_v62, -inf }
 0x245   :  { %v1240_v6 = vmax.f32 %v1236_v25, %v1228_v0  ;;  %v1239_v49 = vmax.f32 %v1235_v53, %v1227_v18 }
 0x246   :  { %v1190_v46 = vpop.permute.xlu1 %1189  ;;  %v1187_v15 = vpop.permute.xlu0 %1186 }
 0x247   :  { %vm1214_vm14 = vcmp.eq.s32.totalorder %v1190_v46, 1  ;;  %vm1213_vm15 = vcmp.eq.s32.totalorder %v1187_v15, 1 }
 0x248   :  { %v1230_v12 = vsel %vm1214_vm14, %v2117_v59, -inf  ;;  %v1229_v13 = vsel %vm1213_vm15, %v2125_v43, -inf }
 0x249   :  { %v1242_v21 = vmax.f32 %v1238_v30, %v1230_v12  ;;  %v1241_v55 = vmax.f32 %v1237_v31, %v1229_v13 }
 0x24a   :  { %v1196_v56 = vpop.permute.xlu1 %1195  ;;  %v1193_v3 = vpop.permute.xlu0 %1192 }
 0x24b   :  { %vm1216_vm0 = vcmp.eq.s32.totalorder %v1196_v56, 1  ;;  %vm1215_vm2 = vcmp.eq.s32.totalorder %v1193_v3, 1 }
 0x24c   :  { %v1232_v24 = vsel %vm1216_vm0, %v2128_v23, -inf  ;;  %v1231_v29 = vsel %vm1215_vm2, %v2140_v39, -inf }
 0x24d   :  { %v1244_v44 = vmax.f32 %v1240_v6, %v1232_v24  ;;  %v1243_v26 = vmax.f32 %v1239_v49, %v1231_v29 }
 0x24e   :  { %v1202_v37 = vpop.permute.xlu1 %1201  ;;  %v1199_v10 = vpop.permute.xlu0 %1198 }
 0x24f   :  { %v1247_v54 = vmax.f32 %v1243_v26, %v1244_v44  ;;  %vm1218_vm3 = vcmp.eq.s32.totalorder %v1202_v37, 1  ;;  %vm1217_vm4 = vcmp.eq.s32.totalorder %v1199_v10, 1 }
 0x250   :  { %v1234_v17 = vsel %vm1218_vm3, %v2142_v40, -inf  ;;  %v1233_v32 = vsel %vm1217_vm4, %v2144_v14, -inf }
 0x251   :  { %v1246_v33 = vmax.f32 %v1242_v21, %v1234_v17  ;;  %v1245_v60 = vmax.f32 %v1241_v55, %v1233_v32 }
 0x252   :  { %v1293_v1 = vpop.permute.xlu1 %1292  ;;  %v1290_v8 = vpop.permute.xlu0 %1289 }
 0x253   :  { %v1248_v5 = vmax.f32 %v1245_v60, %v1246_v33  ;;  %vm1337_vm7 = vcmp.eq.s32.totalorder %v1293_v1, 1  ;;  %vm1336_vm8 = vcmp.eq.s32.totalorder %v1290_v8, 1 }
 0x254   :  { %v1353_v21 = vsel %vm1337_vm7, %v2058_v58, -inf  ;;  %v1352_v55 = vsel %vm1336_vm8, %v2047_v48, -inf }
 0x255   :  { %v1249_v20 = vmax.f32 %v1247_v54, %v1248_v5 }
 0x256   :  { %v1299_v52 = vpop.permute.xlu1 %1298  ;;  %v1296_v19 = vpop.permute.xlu0 %1295 }
 0x257   :  { %v1250_v36 = vrot.slane %v1249_v20, 4  ;;  %vm1339_vm10 = vcmp.eq.s32.totalorder %v1299_v52, 1  ;;  %vm1338_vm11 = vcmp.eq.s32.totalorder %v1296_v19, 1 }
 0x258   :  { %v1355_v3 = vsel %vm1339_vm10, %v2050_v51, -inf  ;;  %v1354_v24 = vsel %vm1338_vm11, %v2034_v34, -inf }
 0x259   :  { %v1251_v16 = vmax.f32 %v1249_v20, %v1250_v36 }
 0x25a   :  { %v1305_v7 = vpop.permute.xlu1 %1304  ;;  %v1302_v50 = vpop.permute.xlu0 %1301 }
 0x25b   :  { %v1252_v25 = vrot.slane %v1251_v16, 2  ;;  %vm1341_vm5 = vcmp.eq.s32.totalorder %v1305_v7, 1  ;;  %vm1340_vm6 = vcmp.eq.s32.totalorder %v1302_v50, 1 }
 0x25c   :  { %v1357_v12 = vsel %vm1341_vm5, %v2068_v11, -inf  ;;  %v1356_v13 = vsel %vm1340_vm6, %v2086_v61, -inf }
 0x25d   :  { %v1253_v53 = vmax.f32 %v1251_v16, %v1252_v25  ;;  %v1369_v26 = vmax.f32 %v1353_v21, %v1357_v12  ;;  %v1368_v37 = vmax.f32 %v1352_v55, %v1356_v13 }
 0x25e   :  { %v1311_v22 = vpop.permute.xlu1 %1310  ;;  %v1308_v9 = vpop.permute.xlu0 %1307 }
 0x25f   :  { %v1254_v4 = vrot.slane %v1253_v53, 1  ;;  %vm1343_vm9 = vcmp.eq.s32.totalorder %v1311_v22, 1  ;;  %vm1342_vm12 = vcmp.eq.s32.totalorder %v1308_v9, 1 }
 0x260   :  { %v1359_v56 = vsel %vm1343_vm9, %v2089_v57, -inf  ;;  %v1358_v29 = vsel %vm1342_vm12, %v2101_v35, -inf }
 0x261   :  { %v1255_v28 = vmax.f32 %v1253_v53, %v1254_v4  ;;  %v1371_v32 = vmax.f32 %v1355_v3, %v1359_v56  ;;  %v1370_v33 = vmax.f32 %v1354_v24, %v1358_v29 }
 0x262   :  { %v1317_v2 = vpop.permute.xlu1 %1316  ;;  %v1314_v63 = vpop.permute.xlu0 %1313 }
 0x263   :  { %v2516_v27 = vsel %vm1530_vm1, %v1529_v45, %v1255_v28  ;;  %vm1345_vm13 = vcmp.eq.s32.totalorder %v1317_v2, 1  ;;  %vm1344_vm14 = vcmp.eq.s32.totalorder %v1314_v63, 1 }
 0x264   :  { %v1361_v44 = vsel %vm1345_vm13, %v2104_v47, -inf  ;;  %v1360_v10 = vsel %vm1344_vm14, %v2107_v62, -inf }
 0x265   :  { %v1373_v60 = vmax.f32 %v1369_v26, %v1361_v44  ;;  %v1372_v1 = vmax.f32 %v1368_v37, %v1360_v10 }
 0x266   :  { %v1426_v41 = vpop.permute.xlu1 %1425  ;;  %v1423_v30 = vpop.permute.xlu0 %1422 }
 0x267   :  { %vm1470_vm15 = vcmp.eq.s32.totalorder %v1426_v41, 1  ;;  %vm1469_vm0 = vcmp.eq.s32.totalorder %v1423_v30, 1 }
 0x268   :  { %v1486_v8 = vsel %vm1470_vm15, %v2058_v58, -inf  ;;  %v1485_v5 = vsel %vm1469_vm0, %v2047_v48, -inf }
 0x26a   :  { %v1432_v31 = vpop.permute.xlu1 %1431  ;;  %v1429_v38 = vpop.permute.xlu0 %1428 }
 0x26b   :  { %vm1472_vm4 = vcmp.eq.s32.totalorder %v1432_v31, 1  ;;  %vm1471_vm1 = vcmp.eq.s32.totalorder %v1429_v38, 1 }
 0x26c   :  { %v1488_v16 = vsel %vm1472_vm4, %v2050_v51, -inf  ;;  %v1487_v7 = vsel %vm1471_vm1, %v2034_v34, -inf }
 0x26e   :  { %v1438_v42 = vpop.permute.xlu1 %1437  ;;  %v1435_v0 = vpop.permute.xlu0 %1434 }
 0x26f   :  { %vm1474_vm5 = vcmp.eq.s32.totalorder %v1438_v42, 1  ;;  %vm1473_vm6 = vcmp.eq.s32.totalorder %v1435_v0, 1 }
 0x270   :  { %v1490_v50 = vsel %vm1474_vm5, %v2068_v11, -inf  ;;  %v1489_v58 = vsel %vm1473_vm6, %v2086_v61, -inf  ;;  %vm1532_vm5 = vcmask 1045504   ;;  %vm1534_vm6 = vcmask 1046528  }
 0x271   :  { %v1502_v4 = vmax.f32 %v1486_v8, %v1490_v50  ;;  %v1501_v28 = vmax.f32 %v1485_v5, %v1489_v58 }
 0x272   :  { %v1444_v18 = vpop.permute.xlu1 %1443  ;;  %v2518_v6 = vpop.permute.xlu0 %1440 }
 0x273   :  { %vm1476_vm7 = vcmp.eq.s32.totalorder %v1444_v18, 1  ;;  %vm1475_vm10 = vcmp.eq.s32.totalorder %v2518_v6, 1 }
 0x274   :  { %v1492_v53 = vsel %vm1476_vm7, %v2089_v57, -inf  ;;  %v1491_v63 = vsel %vm1475_vm10, %v2101_v35, -inf }
 0x275   :  { %v1504_v38 = vmax.f32 %v1488_v16, %v1492_v53  ;;  %v1503_v35 = vmax.f32 %v1487_v7, %v1491_v63 }
 0x276   :  { %v1323_v49 = vpop.permute.xlu1 %1322  ;;  %v1320_v46 = vpop.permute.xlu0 %1319 }
 0x277   :  { %vm1347_vm2 = vcmp.eq.s32.totalorder %v1323_v49, 1  ;;  %vm1346_vm3 = vcmp.eq.s32.totalorder %v1320_v46, 1 }
 0x278   :  { %v1363_v20 = vsel %vm1347_vm2, %v2117_v59, -inf  ;;  %v1362_v52 = vsel %vm1346_vm3, %v2125_v43, -inf }
 0x279   :  { %v1375_v22 = vmax.f32 %v1371_v32, %v1363_v20  ;;  %v1374_v9 = vmax.f32 %v1370_v33, %v1362_v52 }
 0x27a   :  { %v2520_v45 = vpop.permute.xlu1 %1449  ;;  %v2522_v15 = vpop.permute.xlu0 %1446 }
 0x27b   :  { %vm1478_vm11 = vcmp.eq.s32.totalorder %v2520_v45, 1  ;;  %vm1477_vm12 = vcmp.eq.s32.totalorder %v2522_v15, 1 }
 0x27c   :  { %v1494_v41 = vsel %vm1478_vm11, %v2104_v47, -inf  ;;  %v1493_v42 = vsel %vm1477_vm12, %v2107_v62, -inf }
 0x27d   :  { %v1506_v47 = vmax.f32 %v1502_v4, %v1494_v41  ;;  %v1505_v15 = vmax.f32 %v1501_v28, %v1493_v42 }
 0x27e   :  { %v1456_v54 = vpop.permute.xlu1 %1455  ;;  %v1453_v17 = vpop.permute.xlu0 %1452 }
 0x27f   :  { %vm1480_vm13 = vcmp.eq.s32.totalorder %v1456_v54, 1  ;;  %vm1479_vm14 = vcmp.eq.s32.totalorder %v1453_v17, 1 }
 0x280   :  { %v1496_v0 = vsel %vm1480_vm13, %v2117_v59, -inf  ;;  %v1495_v18 = vsel %vm1479_vm14, %v2125_v43, -inf }
 0x281   :  { %v1508_v21 = vmax.f32 %v1504_v38, %v1496_v0  ;;  %v1507_v55 = vmax.f32 %v1503_v35, %v1495_v18 }
 0x282   :  { %v1329_v19 = vpop.permute.xlu1 %1328  ;;  %v1326_v36 = vpop.permute.xlu0 %1325 }
 0x283   :  { %vm1349_vm8 = vcmp.eq.s32.totalorder %v1329_v19, 1  ;;  %vm1348_vm9 = vcmp.eq.s32.totalorder %v1326_v36, 1 }
 0x284   :  { %v1365_v25 = vsel %vm1349_vm8, %v2128_v23, -inf  ;;  %v1364_v48 = vsel %vm1348_vm9, %v2140_v39, -inf }
 0x285   :  { %v1377_v11 = vmax.f32 %v1373_v60, %v1365_v25  ;;  %v1376_v61 = vmax.f32 %v1372_v1, %v1364_v48 }
 0x286   :  { %v1335_v34 = vpop.permute.xlu1 %1334  ;;  %v1332_v51 = vpop.permute.xlu0 %1331 }
 0x287   :  { %vm1351_vm15 = vcmp.eq.s32.totalorder %v1335_v34, 1  ;;  %vm1350_vm0 = vcmp.eq.s32.totalorder %v1332_v51, 1  ;;  %v1380_v45 = vmax.f32 %v1376_v61, %v1377_v11 }
 0x288   :  { %v1367_v57 = vsel %vm1351_vm15, %v2142_v40, -inf  ;;  %v1366_v2 = vsel %vm1350_vm0, %v2144_v14, -inf }
 0x289   :  { %v1379_v30 = vmax.f32 %v1375_v22, %v1367_v57  ;;  %v1378_v31 = vmax.f32 %v1374_v9, %v1366_v2 }
 0x28a   :  { %v1462_v49 = vpop.permute.xlu1 %1461  ;;  %v1459_v46 = vpop.permute.xlu0 %1458 }
 0x28b   :  { %v1381_v6 = vmax.f32 %v1378_v31, %v1379_v30  ;;  %vm1482_vm2 = vcmp.eq.s32.totalorder %v1462_v49, 1  ;;  %vm1481_vm3 = vcmp.eq.s32.totalorder %v1459_v46, 1 }
 0x28c   :  { %v1498_v12 = vsel %vm1482_vm2, %v2128_v23, -inf  ;;  %v1497_v13 = vsel %vm1481_vm3, %v2140_v39, -inf }
 0x28d   :  { %v1382_v62 = vmax.f32 %v1380_v45, %v1381_v6  ;;  %v1510_v59 = vmax.f32 %v1506_v47, %v1498_v12  ;;  %v1509_v24 = vmax.f32 %v1505_v15, %v1497_v13 }
 0x28e   :  { %v1468_v56 = vpop.permute.xlu1 %1467  ;;  %v1465_v3 = vpop.permute.xlu0 %1464 }
 0x28f   :  { %v1383_v43 = vrot.slane %v1382_v62, 4  ;;  %vm1484_vm4 = vcmp.eq.s32.totalorder %v1468_v56, 1  ;;  %vm1483_vm1 = vcmp.eq.s32.totalorder %v1465_v3, 1  ;;  %v1513_v39 = vmax.f32 %v1509_v24, %v1510_v59 }
 0x290   :  { %v1500_v29 = vsel %vm1484_vm4, %v2142_v40, -inf  ;;  %v1499_v44 = vsel %vm1483_vm1, %v2144_v14, -inf }
 0x291   :  { %v1384_v26 = vmax.f32 %v1382_v62, %v1383_v43  ;;  %v1512_v37 = vmax.f32 %v1508_v21, %v1500_v29  ;;  %v1511_v23 = vmax.f32 %v1507_v55, %v1499_v44 }
 0x293   :  { %v1385_v10 = vrot.slane %v1384_v26, 2  ;;  %v1514_v54 = vmax.f32 %v1511_v23, %v1512_v37 }
 0x295   :  { %v1515_v17 = vmax.f32 %v1513_v39, %v1514_v54  ;;  %v1386_v32 = vmax.f32 %v1384_v26, %v1385_v10 }
 0x297   :  { %v1516_v33 = vrot.slane %v1515_v17, 4  ;;  %v1387_v1 = vrot.slane %v1386_v32, 1 }
 0x299   :  { %v1517_v60 = vmax.f32 %v1515_v17, %v1516_v33  ;;  %v1388_v20 = vmax.f32 %v1386_v32, %v1387_v1 }
 0x29b   :  { %v1518_v8 = vrot.slane %v1517_v60, 2  ;;  %v1533_v14 = vsel %vm1532_vm5, %v2516_v27, %v1388_v20 }
 0x29d   :  { %v1519_v5 = vmax.f32 %v1517_v60, %v1518_v8 }
 0x29f   :  { %v1520_v52 = vrot.slane %v1519_v5, 1 }
 0x2a1   :  { %v1521_v40 = vmax.f32 %v1519_v5, %v1520_v52 }
 0x2a3   :  { %v1535_v19 = vsel %vm1534_vm6, %v1533_v14, %v1521_v40 }
 0x2a4   :  { %1536 = vst [vmem:[%s2575_s7] sm:$0xff] %v1535_v19 }

</bundles_post_ra>
